<compile_context>
chip_gen: v6e
topology: v6e:2x2x1
jax: 0.10.0
libtpu: 0.0.40
codegen_flags: <defaults>
</compile_context>

<pallas_src>
import functools

import jax
import jax.numpy as jnp
from jax.experimental import pallas as pl
from jax.experimental.pallas import tpu as pltpu


# ----------------------------- Pallas kernel --------------------------------

def _layernorm_f32(x, w, b, eps=1e-5):
    xf = x.astype(jnp.float32)
    mu = jnp.mean(xf, axis=-1, keepdims=True)
    var = jnp.mean((xf - mu) ** 2, axis=-1, keepdims=True)
    return (xf - mu) * jax.lax.rsqrt(var + eps) * w + b


def cross_modality_attention_kernel(
    x1_ref, x2_ref,
    wq_ref, bq_ref,                     # composed query proj (scale folded in)
    wkv_ref, bkv_ref,                   # composed + fused key|value proj (D, 2D)
    wo_ref, bo_ref,                     # out_proj (full width, unsplit)
    lnw_ref, lnb_ref,                   # LayerNorm
    w1_ref, b1_ref, w2_ref, b2_ref,     # MLP c_fc / c_proj
    out_ref,
    *, n_head,
):
    f32 = jnp.float32
    bf16 = jnp.bfloat16

    nb, seq_q, d_model = x1_ref.shape
    seq_kv = x2_ref.shape[1]
    head_dim = d_model // n_head

    # x1 stays f32 (residual / LayerNorm path); x2 arrives bf16 (MXU-only input).
    x1 = x1_ref[...].astype(f32).reshape(nb * seq_q, d_model)
    x2 = x2_ref[...].reshape(nb * seq_kv, d_model)

    def lin(x, w_ref, b_ref):
        # bf16 MXU inputs, f32 accumulation, f32 bias add.
        return jnp.dot(x.astype(w_ref.dtype), w_ref[...],
                       preferred_element_type=f32) + b_ref[...]

    # Projections (query scale already folded into wq/bq; K|V fused into one
    # matmul with 2D output columns).  Cast to bf16 once — these values only
    # ever feed the MXU from here on.
    q = lin(x1, wq_ref, bq_ref).astype(bf16)        # (nb*L, D)
    kv = lin(x2, wkv_ref, bkv_ref).astype(bf16)     # (nb*S, 2D)

    # Split heads once into a leading (head*batch) dim.  Mosaic's dot_general
    # lowering reliably supports only a single leading batch dimension, so the
    # head axis is folded into it rather than used as a second batch axis.
    def split_heads(x, col0, rows):
        parts = [
            x[:, col0 + h * head_dim: col0 + (h + 1) * head_dim]
            .reshape(1, nb * rows, head_dim)
            for h in range(n_head)
        ]
        return jnp.concatenate(parts, axis=0).reshape(n_head * nb, rows, head_dim)

    qh = split_heads(q, 0, seq_q)          # (H*nb, L, hd)
    kh = split_heads(kv, 0, seq_kv)        # (H*nb, S, hd)
    vh = split_heads(kv, d_model, seq_kv)  # (H*nb, S, hd)

    # Batched attention over all (head, batch) pairs at once (f32 softmax).
    s = jnp.einsum("bld,bsd->bls", qh, kh, preferred_element_type=f32)
    s = s - jnp.max(s, axis=-1, keepdims=True)
    p = jnp.exp(s)
    p = p * pl.reciprocal(jnp.sum(p, axis=-1, keepdims=True), approx=True)
    o = jnp.einsum("bls,bsd->bld", p.astype(bf16), vh,
                   preferred_element_type=f32)       # (H*nb, L, hd)

    # Merge heads back onto the lane dim and apply the full-width out_proj in a
    # single K = D matmul (no per-head accumulation chain).
    o = o.reshape(n_head, nb * seq_q, head_dim).astype(bf16)
    o_merged = jnp.concatenate([o[h] for h in range(n_head)], axis=-1)  # (nb*L, D)
    attn = jnp.dot(o_merged, wo_ref[...], preferred_element_type=f32) + bo_ref[...]

    # residual + MLP block (all elementwise math in f32).
    x1_out = x1 + attn
    ln_out = _layernorm_f32(x1_out, lnw_ref[...], lnb_ref[...])
    h1 = lin(ln_out, w1_ref, b1_ref)                  # (nb*L, 4D)
    h1 = h1 * jax.nn.sigmoid(1.702 * h1)              # QuickGELU
    mlp = lin(h1, w2_ref, b2_ref)                     # (nb*L, D)

    out_ref[...] = (x1_out + mlp).reshape(nb, seq_q, d_model).astype(out_ref.dtype)


# ------------------------------- wrapper -------------------------------------

def _vmem_capacity_bytes():
    try:
        return int(pltpu.get_tpu_info().vmem_capacity_bytes)
    except Exception:
        return 64 * 1024 * 1024    # conservative (v7x-sized) fallback


def _pick_block_n(n, seq_q, seq_kv, d_model, n_head, num_tc, vmem_limit):
    """Batch elements per grid step.

    Single-TC chips (v5e/v6e): fewer, fatter steps — target ~512 MXU rows, no
    minimum step count (extra steps are pure ~0.35us/step overhead).  v7x
    (2 TCs): target ~256 rows/step and keep the step count a multiple of 2 so
    both TensorCores get work.  A rough activation-VMEM estimate keeps the
    block inside the scoped limit after subtracting the resident weights.
    """
    target_rows = 512 if num_tc == 1 else 256
    d_ff = 4 * d_model

    weight_bytes = 2 * (d_model * d_model            # wq   (bf16)
                        + d_model * 2 * d_model      # wkv
                        + d_model * d_model          # wo
                        + 2 * d_model * d_ff)        # w1 + w2
    budget = max(vmem_limit - weight_bytes, vmem_limit // 4)

    def act_bytes(nb):
        rq, rk = nb * seq_q, nb * seq_kv
        return (2 * rq * d_model * 4               # x1 block (f32, double-buffered)
                + 2 * rk * d_model * 2             # x2 block (bf16, double-buffered)
                + 2 * rq * d_model * 4             # out block (f32, double-buffered)
                + rq * d_model * 6                 # q (f32 + bf16)
                + rk * 2 * d_model * 6             # kv (f32 + bf16)
                + n_head * nb * seq_q * seq_kv * 8  # scores + probs (f32)
                + rq * d_ff * 4                    # h1 (f32)
                + rq * d_model * 12)               # attn / x1_out / mlp (f32)

    def search(require_tc_multiple):
        best = 0
        for nb in range(1, n + 1):
            if n % nb:
                continue
            steps = n // nb
            if require_tc_multiple and steps % num_tc != 0:
                continue
            if nb != 1 and nb * seq_q > target_rows:
                continue
            if nb != 1 and act_bytes(nb) > budget:
                continue
            best = max(best, nb)
        return best

    best = search(True)
    if best == 0:
        best = search(False)
    return max(best, 1)


def _weight_spec(arr, single_buffer):
    nd = arr.ndim
    idx = lambda b, _nd=nd: (0,) * _nd
    if single_buffer:
        # Grid-invariant block: single-buffer it (never re-fetched across steps).
        return pl.BlockSpec(arr.shape, idx, pipeline_mode=pl.Buffered(1))
    return pl.BlockSpec(arr.shape, idx)


def cross_modality_attention(x1, x2, params, n_head, block_n=None):
    """x1: (L, N, D), x2: (S, N, D)  ->  (L, N, D)   (seq-first, like PyTorch)."""
    L, N, D = x1.shape
    S = x2.shape[0]
    hd = D // n_head

    f32 = jnp.float32
    bf16 = jnp.bfloat16

    vmem_cap = _vmem_capacity_bytes()
    num_tc = 2 if vmem_cap <= 64 * 1024 * 1024 else 1     # 64 MiB VMEM <=> v7x (2 TCs)
    vmem_limit = max(32 * 1024 * 1024, int(vmem_cap * 0.8))

    if block_n is None:
        block_n = _pick_block_n(N, L, S, D, n_head, num_tc, vmem_limit)
    assert N % block_n == 0

    x1b = jnp.transpose(x1, (1, 0, 2))                 # (N, L, D) f32 (residual path)
    x2b = jnp.transpose(x2, (1, 0, 2)).astype(bf16)    # (N, S, D) bf16 (MXU-only)

    scale = 1.0 / (hd ** 0.5)

    # Fold outer q/k/v projections into the MHA in_proj (composition in f32,
    # bf16 cast only on the final product); fold the attention scale into the
    # composed query weights/bias; fuse K|V into a single (D, 2D) projection.
    wq_c = ((params["wq"] @ params["wiq"]) * scale).astype(bf16)
    bq_c = ((params["bq"] @ params["wiq"] + params["biq"]) * scale).astype(f32)
    wk_c = params["wk"] @ params["wik"]
    bk_c = params["bk"] @ params["wik"] + params["bik"]
    wv_c = params["wv"] @ params["wiv"]
    bv_c = params["bv"] @ params["wiv"] + params["biv"]
    wkv = jnp.concatenate([wk_c, wv_c], axis=1).astype(bf16)    # (D, 2D)
    bkv = jnp.concatenate([bk_c, bv_c], axis=1).astype(f32)     # (1, 2D)
    wo = params["wo"].astype(bf16)
    bo = params["bo"].astype(f32)
    lnw = params["lnw"].astype(f32)
    lnb = params["lnb"].astype(f32)
    w1 = params["w1"].astype(bf16)
    b1 = params["b1"].astype(f32)
    w2 = params["w2"].astype(bf16)
    b2 = params["b2"].astype(f32)

    weight_args = [wq_c, bq_c, wkv, bkv, wo, bo, lnw, lnb, w1, b1, w2, b2]

    def run(single_buffer_weights):
        in_specs = (
            [pl.BlockSpec((block_n, L, D), lambda b: (b, 0, 0)),
             pl.BlockSpec((block_n, S, D), lambda b: (b, 0, 0))]
            + [_weight_spec(w, single_buffer_weights) for w in weight_args]
        )
        return pl.pallas_call(
            functools.partial(cross_modality_attention_kernel, n_head=n_head),
            out_shape=jax.ShapeDtypeStruct((N, L, D), x1.dtype),
            grid_spec=pltpu.PrefetchScalarGridSpec(
                num_scalar_prefetch=0,
                grid=(N // block_n,),
                in_specs=in_specs,
                out_specs=pl.BlockSpec((block_n, L, D), lambda b: (b, 0, 0)),
            ),
            compiler_params=pltpu.CompilerParams(
                dimension_semantics=("parallel",),
                vmem_limit_bytes=vmem_limit),
        )(x1b, x2b, *weight_args)

    try:
        out = run(True)
    except Exception:
        # pl.Buffered(1) not accepted by this jax version -> default buffering.
        out = run(False)

    return jnp.transpose(out, (1, 0, 2))   # back to (L, N, D)


# --------------------------- pure-JAX reference ------------------------------

def reference(x1, x2, p, n_head):
    L, N, D = x1.shape
    S = x2.shape[0]
    hd = D // n_head
    scale = 1.0 / (hd ** 0.5)

    def lin(x, w, b):
        return x @ w + b

    q = lin(x1, p["wq"], p["bq"])
    k = lin(x2, p["wk"], p["bk"])
    v = lin(x2, p["wv"], p["bv"])
    q2 = lin(q, p["wiq"], p["biq"]).reshape(L, N, n_head, hd)
    k2 = lin(k, p["wik"], p["bik"]).reshape(S, N, n_head, hd)
    v2 = lin(v, p["wiv"], p["biv"]).reshape(S, N, n_head, hd)
    s = jnp.einsum("lnhd,snhd->nhls", q2, k2) * scale
    a = jax.nn.softmax(s, axis=-1)
    o = jnp.einsum("nhls,snhd->lnhd", a, v2).reshape(L, N, D)
    attn = lin(o, p["wo"], p["bo"])
    x1_out = x1 + attn
    ln = _layernorm_f32(x1_out, p["lnw"], p["lnb"])
    h = lin(ln, p["w1"], p["b1"])
    h = h * jax.nn.sigmoid(1.702 * h)
    return x1_out + lin(h, p["w2"], p["b2"])


# ---------------------------------- main --------------------------------------

def make_params(key, d_model):
    d_ff = 4 * d_model
    shapes = {
        "wq": (d_model, d_model), "bq": (1, d_model),
        "wk": (d_model, d_model), "bk": (1, d_model),
        "wv": (d_model, d_model), "bv": (1, d_model),
        "wiq": (d_model, d_model), "biq": (1, d_model),
        "wik": (d_model, d_model), "bik": (1, d_model),
        "wiv": (d_model, d_model), "biv": (1, d_model),
        "wo": (d_model, d_model), "bo": (1, d_model),
        "lnw": (1, d_model), "lnb": (1, d_model),
        "w1": (d_model, d_ff), "b1": (1, d_ff),
        "w2": (d_ff, d_model), "b2": (1, d_model),
    }
    params = {}
    keys = jax.random.split(key, len(shapes))
    for (name, shape), kk in zip(shapes.items(), keys):
        if name == "lnw":
            params[name] = jnp.ones(shape, jnp.float32)
        elif name.startswith("b") or name == "lnb":
            params[name] = 0.01 * jax.random.normal(kk, shape, jnp.float32)
        else:
            params[name] = 0.1 * jax.random.normal(kk, shape, jnp.float32)
    return params


if __name__ == "__main__":
    L, S, N, D, H = 8, 8, 4, 32, 4     # seq_q, seq_kv, batch, d_model, n_head

    key = jax.random.PRNGKey(0)
    kx1, kx2, kp = jax.random.split(key, 3)
    x1 = jax.random.normal(kx1, (L, N, D), jnp.float32)
    x2 = jax.random.normal(kx2, (S, N, D), jnp.float32)
    params = make_params(kp, D)

    out = jax.block_until_ready(cross_modality_attention(x1, x2, params, H))
    ref = jax.block_until_ready(reference(x1, x2, params, H))

    assert out.shape == (L, N, D)
    assert jnp.all(jnp.isfinite(out))
    assert jnp.allclose(out, ref, atol=2e-2, rtol=2e-2), (
        f"max abs diff {jnp.max(jnp.abs(out - ref))}")

    print("KERNEL_OK")
</pallas_src>

<mosaic_0001>
module attributes {stable_mosaic.version = 11 : i64} {
  func.func @cross_modality_attention_kernel(%arg0: i32, %arg1: memref<2x8x32xf32, #tpu.memory_space<vmem>>, %arg2: memref<2x8x32xbf16, #tpu.memory_space<vmem>>, %arg3: memref<32x32xbf16, #tpu.memory_space<vmem>>, %arg4: memref<1x32xf32, #tpu.memory_space<vmem>>, %arg5: memref<32x64xbf16, #tpu.memory_space<vmem>>, %arg6: memref<1x64xf32, #tpu.memory_space<vmem>>, %arg7: memref<32x32xbf16, #tpu.memory_space<vmem>>, %arg8: memref<1x32xf32, #tpu.memory_space<vmem>>, %arg9: memref<1x32xf32, #tpu.memory_space<vmem>>, %arg10: memref<1x32xf32, #tpu.memory_space<vmem>>, %arg11: memref<32x128xbf16, #tpu.memory_space<vmem>>, %arg12: memref<1x128xf32, #tpu.memory_space<vmem>>, %arg13: memref<128x32xbf16, #tpu.memory_space<vmem>>, %arg14: memref<1x32xf32, #tpu.memory_space<vmem>>, %arg15: memref<2x8x32xf32, #tpu.memory_space<vmem>>) attributes {dimension_semantics = [#tpu.dimension_semantics<parallel>], iteration_bounds = array<i64: 2>, scalar_prefetch = 0 : i64, scratch_operands = 0 : i64, tpu.core_type = #tpu.core_type<tc>, window_params = [{transform_indices = @transform_0, window_bounds = array<i64: 2, 8, 32>}, {transform_indices = @transform_1, window_bounds = array<i64: 2, 8, 32>}, {pipeline_mode = #tpu.pipeline_mode<synchronous>, transform_indices = @transform_2, window_bounds = array<i64: 32, 32>}, {pipeline_mode = #tpu.pipeline_mode<synchronous>, transform_indices = @transform_3, window_bounds = array<i64: 1, 32>}, {pipeline_mode = #tpu.pipeline_mode<synchronous>, transform_indices = @transform_4, window_bounds = array<i64: 32, 64>}, {pipeline_mode = #tpu.pipeline_mode<synchronous>, transform_indices = @transform_5, window_bounds = array<i64: 1, 64>}, {pipeline_mode = #tpu.pipeline_mode<synchronous>, transform_indices = @transform_6, window_bounds = array<i64: 32, 32>}, {pipeline_mode = #tpu.pipeline_mode<synchronous>, transform_indices = @transform_7, window_bounds = array<i64: 1, 32>}, {pipeline_mode = #tpu.pipeline_mode<synchronous>, transform_indices = @transform_8, window_bounds = array<i64: 1, 32>}, {pipeline_mode = #tpu.pipeline_mode<synchronous>, transform_indices = @transform_9, window_bounds = array<i64: 1, 32>}, {pipeline_mode = #tpu.pipeline_mode<synchronous>, transform_indices = @transform_10, window_bounds = array<i64: 32, 128>}, {pipeline_mode = #tpu.pipeline_mode<synchronous>, transform_indices = @transform_11, window_bounds = array<i64: 1, 128>}, {pipeline_mode = #tpu.pipeline_mode<synchronous>, transform_indices = @transform_12, window_bounds = array<i64: 128, 32>}, {pipeline_mode = #tpu.pipeline_mode<synchronous>, transform_indices = @transform_13, window_bounds = array<i64: 1, 32>}, {transform_indices = @transform_14, window_bounds = array<i64: 2, 8, 32>}]} {
    %c0 = arith.constant 0 : index
    %c0_0 = arith.constant 0 : index
    %c0_1 = arith.constant 0 : index
    %0 = vector.load %arg1[%c0, %c0_0, %c0_1] : memref<2x8x32xf32, #tpu.memory_space<vmem>>, vector<2x8x32xf32>
    %1 = vector.shape_cast %0 : vector<2x8x32xf32> to vector<16x32xf32>
    %c0_2 = arith.constant 0 : index
    %c0_3 = arith.constant 0 : index
    %c0_4 = arith.constant 0 : index
    %2 = vector.load %arg2[%c0_2, %c0_3, %c0_4] : memref<2x8x32xbf16, #tpu.memory_space<vmem>>, vector<2x8x32xbf16>
    %3 = vector.shape_cast %2 : vector<2x8x32xbf16> to vector<16x32xbf16>
    %4 = arith.truncf %1 : vector<16x32xf32> to vector<16x32xbf16>
    %c0_5 = arith.constant 0 : index
    %c0_6 = arith.constant 0 : index
    %5 = vector.load %arg3[%c0_5, %c0_6] : memref<32x32xbf16, #tpu.memory_space<vmem>>, vector<32x32xbf16>
    %cst = arith.constant dense<0.000000e+00> : vector<16x32xf32>
    %6 = tpu.matmul %4, %5, %cst {dimension_numbers = #tpu.dot_dimension_numbers<[1], [0], [0], [1], [0, 0, 1, 1], [], []>} : vector<16x32xbf16>, vector<32x32xbf16>, vector<16x32xf32> -> vector<16x32xf32>
    %c0_7 = arith.constant 0 : index
    %c0_8 = arith.constant 0 : index
    %7 = vector.load %arg4[%c0_7, %c0_8] : memref<1x32xf32, #tpu.memory_space<vmem>>, vector<1x32xf32>
    %8 = vector.broadcast %7 : vector<1x32xf32> to vector<16x32xf32>
    %9 = arith.addf %6, %8 : vector<16x32xf32>
    %10 = arith.truncf %9 : vector<16x32xf32> to vector<16x32xbf16>
    %c0_9 = arith.constant 0 : index
    %c0_10 = arith.constant 0 : index
    %11 = vector.load %arg5[%c0_9, %c0_10] : memref<32x64xbf16, #tpu.memory_space<vmem>>, vector<32x64xbf16>
    %cst_11 = arith.constant dense<0.000000e+00> : vector<16x64xf32>
    %12 = tpu.matmul %3, %11, %cst_11 {dimension_numbers = #tpu.dot_dimension_numbers<[1], [0], [0], [1], [0, 0, 1, 1], [], []>} : vector<16x32xbf16>, vector<32x64xbf16>, vector<16x64xf32> -> vector<16x64xf32>
    %c0_12 = arith.constant 0 : index
    %c0_13 = arith.constant 0 : index
    %13 = vector.load %arg6[%c0_12, %c0_13] : memref<1x64xf32, #tpu.memory_space<vmem>>, vector<1x64xf32>
    %14 = vector.broadcast %13 : vector<1x64xf32> to vector<16x64xf32>
    %15 = arith.addf %12, %14 : vector<16x64xf32>
    %16 = arith.truncf %15 : vector<16x64xf32> to vector<16x64xbf16>
    %17 = vector.extract_strided_slice %10 {offsets = [0, 0], sizes = [16, 8], strides = [1, 1]} : vector<16x32xbf16> to vector<16x8xbf16>
    %18 = vector.shape_cast %17 : vector<16x8xbf16> to vector<1x16x8xbf16>
    %19 = vector.extract_strided_slice %10 {offsets = [0, 8], sizes = [16, 8], strides = [1, 1]} : vector<16x32xbf16> to vector<16x8xbf16>
    %20 = vector.shape_cast %19 : vector<16x8xbf16> to vector<1x16x8xbf16>
    %21 = vector.extract_strided_slice %10 {offsets = [0, 16], sizes = [16, 8], strides = [1, 1]} : vector<16x32xbf16> to vector<16x8xbf16>
    %22 = vector.shape_cast %21 : vector<16x8xbf16> to vector<1x16x8xbf16>
    %23 = vector.extract_strided_slice %10 {offsets = [0, 24], sizes = [16, 8], strides = [1, 1]} : vector<16x32xbf16> to vector<16x8xbf16>
    %24 = vector.shape_cast %23 : vector<16x8xbf16> to vector<1x16x8xbf16>
    %25 = tpu.concatenate %18, %20, %22, %24 in 0 : vector<1x16x8xbf16>, vector<1x16x8xbf16>, vector<1x16x8xbf16>, vector<1x16x8xbf16> -> vector<4x16x8xbf16>
    %26 = vector.shape_cast %25 : vector<4x16x8xbf16> to vector<8x8x8xbf16>
    %27 = vector.extract_strided_slice %16 {offsets = [0, 0], sizes = [16, 8], strides = [1, 1]} : vector<16x64xbf16> to vector<16x8xbf16>
    %28 = vector.shape_cast %27 : vector<16x8xbf16> to vector<1x16x8xbf16>
    %29 = vector.extract_strided_slice %16 {offsets = [0, 8], sizes = [16, 8], strides = [1, 1]} : vector<16x64xbf16> to vector<16x8xbf16>
    %30 = vector.shape_cast %29 : vector<16x8xbf16> to vector<1x16x8xbf16>
    %31 = vector.extract_strided_slice %16 {offsets = [0, 16], sizes = [16, 8], strides = [1, 1]} : vector<16x64xbf16> to vector<16x8xbf16>
    %32 = vector.shape_cast %31 : vector<16x8xbf16> to vector<1x16x8xbf16>
    %33 = vector.extract_strided_slice %16 {offsets = [0, 24], sizes = [16, 8], strides = [1, 1]} : vector<16x64xbf16> to vector<16x8xbf16>
    %34 = vector.shape_cast %33 : vector<16x8xbf16> to vector<1x16x8xbf16>
    %35 = tpu.concatenate %28, %30, %32, %34 in 0 : vector<1x16x8xbf16>, vector<1x16x8xbf16>, vector<1x16x8xbf16>, vector<1x16x8xbf16> -> vector<4x16x8xbf16>
    %36 = vector.shape_cast %35 : vector<4x16x8xbf16> to vector<8x8x8xbf16>
    %37 = vector.extract_strided_slice %16 {offsets = [0, 32], sizes = [16, 8], strides = [1, 1]} : vector<16x64xbf16> to vector<16x8xbf16>
    %38 = vector.shape_cast %37 : vector<16x8xbf16> to vector<1x16x8xbf16>
    %39 = vector.extract_strided_slice %16 {offsets = [0, 40], sizes = [16, 8], strides = [1, 1]} : vector<16x64xbf16> to vector<16x8xbf16>
    %40 = vector.shape_cast %39 : vector<16x8xbf16> to vector<1x16x8xbf16>
    %41 = vector.extract_strided_slice %16 {offsets = [0, 48], sizes = [16, 8], strides = [1, 1]} : vector<16x64xbf16> to vector<16x8xbf16>
    %42 = vector.shape_cast %41 : vector<16x8xbf16> to vector<1x16x8xbf16>
    %43 = vector.extract_strided_slice %16 {offsets = [0, 56], sizes = [16, 8], strides = [1, 1]} : vector<16x64xbf16> to vector<16x8xbf16>
    %44 = vector.shape_cast %43 : vector<16x8xbf16> to vector<1x16x8xbf16>
    %45 = tpu.concatenate %38, %40, %42, %44 in 0 : vector<1x16x8xbf16>, vector<1x16x8xbf16>, vector<1x16x8xbf16>, vector<1x16x8xbf16> -> vector<4x16x8xbf16>
    %46 = vector.shape_cast %45 : vector<4x16x8xbf16> to vector<8x8x8xbf16>
    "tpu.trace_start"() <{level = 10 : i32, message = "bld,bsd->bls"}> : () -> ()
    %cst_14 = arith.constant dense<0.000000e+00> : vector<8x8x8xf32>
    %47 = tpu.matmul %26, %36, %cst_14 {dimension_numbers = #tpu.dot_dimension_numbers<[2], [2], [1], [1], [0, 0, 0, 1, 1, 1], [0], [0]>} : vector<8x8x8xbf16>, vector<8x8x8xbf16>, vector<8x8x8xf32> -> vector<8x8x8xf32>
    "tpu.trace_stop"() : () -> ()
    %cst_15 = arith.constant dense<0xFF800000> : vector<8x8xf32>
    %48 = vector.multi_reduction <maximumf>, %47, %cst_15 [2] : vector<8x8x8xf32> to vector<8x8xf32>
    %49 = vector.shape_cast %48 : vector<8x8xf32> to vector<8x8x1xf32>
    %50 = vector.broadcast %49 : vector<8x8x1xf32> to vector<8x8x8xf32>
    %51 = arith.subf %47, %50 : vector<8x8x8xf32>
    %52 = math.exp %51 : vector<8x8x8xf32>
    %cst_16 = arith.constant dense<0.000000e+00> : vector<8x8xf32>
    %53 = vector.multi_reduction <add>, %52, %cst_16 [2] : vector<8x8x8xf32> to vector<8x8xf32>
    %54 = vector.shape_cast %53 : vector<8x8xf32> to vector<8x8x1xf32>
    %55 = tpu.reciprocal %54 {approx = true} : vector<8x8x1xf32> -> vector<8x8x1xf32>
    %56 = vector.broadcast %55 : vector<8x8x1xf32> to vector<8x8x8xf32>
    %57 = arith.mulf %52, %56 : vector<8x8x8xf32>
    %58 = arith.truncf %57 : vector<8x8x8xf32> to vector<8x8x8xbf16>
    "tpu.trace_start"() <{level = 10 : i32, message = "bls,bsd->bld"}> : () -> ()
    %cst_17 = arith.constant dense<0.000000e+00> : vector<8x8x8xf32>
    %59 = tpu.matmul %58, %46, %cst_17 {dimension_numbers = #tpu.dot_dimension_numbers<[2], [1], [1], [2], [0, 0, 0, 1, 1, 2], [0], [0]>} : vector<8x8x8xbf16>, vector<8x8x8xbf16>, vector<8x8x8xf32> -> vector<8x8x8xf32>
    "tpu.trace_stop"() : () -> ()
    %60 = vector.shape_cast %59 : vector<8x8x8xf32> to vector<4x16x8xf32>
    %61 = arith.truncf %60 : vector<4x16x8xf32> to vector<4x16x8xbf16>
    %62 = vector.extract_strided_slice %61 {offsets = [0, 0, 0], sizes = [1, 16, 8], strides = [1, 1, 1]} : vector<4x16x8xbf16> to vector<1x16x8xbf16>
    %63 = vector.shape_cast %62 : vector<1x16x8xbf16> to vector<16x8xbf16>
    %64 = vector.extract_strided_slice %61 {offsets = [1, 0, 0], sizes = [1, 16, 8], strides = [1, 1, 1]} : vector<4x16x8xbf16> to vector<1x16x8xbf16>
    %65 = vector.shape_cast %64 : vector<1x16x8xbf16> to vector<16x8xbf16>
    %66 = vector.extract_strided_slice %61 {offsets = [2, 0, 0], sizes = [1, 16, 8], strides = [1, 1, 1]} : vector<4x16x8xbf16> to vector<1x16x8xbf16>
    %67 = vector.shape_cast %66 : vector<1x16x8xbf16> to vector<16x8xbf16>
    %68 = vector.extract_strided_slice %61 {offsets = [3, 0, 0], sizes = [1, 16, 8], strides = [1, 1, 1]} : vector<4x16x8xbf16> to vector<1x16x8xbf16>
    %69 = vector.shape_cast %68 : vector<1x16x8xbf16> to vector<16x8xbf16>
    %70 = tpu.concatenate %63, %65, %67, %69 in 1 : vector<16x8xbf16>, vector<16x8xbf16>, vector<16x8xbf16>, vector<16x8xbf16> -> vector<16x32xbf16>
    %c0_18 = arith.constant 0 : index
    %c0_19 = arith.constant 0 : index
    %71 = vector.load %arg7[%c0_18, %c0_19] : memref<32x32xbf16, #tpu.memory_space<vmem>>, vector<32x32xbf16>
    %cst_20 = arith.constant dense<0.000000e+00> : vector<16x32xf32>
    %72 = tpu.matmul %70, %71, %cst_20 {dimension_numbers = #tpu.dot_dimension_numbers<[1], [0], [0], [1], [0, 0, 1, 1], [], []>} : vector<16x32xbf16>, vector<32x32xbf16>, vector<16x32xf32> -> vector<16x32xf32>
    %c0_21 = arith.constant 0 : index
    %c0_22 = arith.constant 0 : index
    %73 = vector.load %arg8[%c0_21, %c0_22] : memref<1x32xf32, #tpu.memory_space<vmem>>, vector<1x32xf32>
    %74 = vector.broadcast %73 : vector<1x32xf32> to vector<16x32xf32>
    %75 = arith.addf %72, %74 : vector<16x32xf32>
    %76 = arith.addf %1, %75 : vector<16x32xf32>
    %c0_23 = arith.constant 0 : index
    %c0_24 = arith.constant 0 : index
    %77 = vector.load %arg9[%c0_23, %c0_24] : memref<1x32xf32, #tpu.memory_space<vmem>>, vector<1x32xf32>
    %c0_25 = arith.constant 0 : index
    %c0_26 = arith.constant 0 : index
    %78 = vector.load %arg10[%c0_25, %c0_26] : memref<1x32xf32, #tpu.memory_space<vmem>>, vector<1x32xf32>
    %cst_27 = arith.constant dense<0.000000e+00> : vector<16xf32>
    %79 = vector.multi_reduction <add>, %76, %cst_27 [1] : vector<16x32xf32> to vector<16xf32>
    %80 = vector.shape_cast %79 : vector<16xf32> to vector<16x1xf32>
    %cst_28 = arith.constant 3.200000e+01 : f32
    %81 = vector.broadcast %cst_28 : f32 to vector<16x1xf32>
    %82 = arith.divf %80, %81 : vector<16x1xf32>
    %83 = vector.broadcast %82 : vector<16x1xf32> to vector<16x32xf32>
    %84 = arith.subf %76, %83 : vector<16x32xf32>
    %85 = arith.mulf %84, %84 : vector<16x32xf32>
    %cst_29 = arith.constant dense<0.000000e+00> : vector<16xf32>
    %86 = vector.multi_reduction <add>, %85, %cst_29 [1] : vector<16x32xf32> to vector<16xf32>
    %87 = vector.shape_cast %86 : vector<16xf32> to vector<16x1xf32>
    %cst_30 = arith.constant 3.200000e+01 : f32
    %88 = vector.broadcast %cst_30 : f32 to vector<16x1xf32>
    %89 = arith.divf %87, %88 : vector<16x1xf32>
    %90 = vector.broadcast %82 : vector<16x1xf32> to vector<16x32xf32>
    %91 = arith.subf %76, %90 : vector<16x32xf32>
    %cst_31 = arith.constant 9.99999974E-6 : f32
    %92 = vector.broadcast %cst_31 : f32 to vector<16x1xf32>
    %93 = arith.addf %89, %92 : vector<16x1xf32>
    %94 = math.rsqrt %93 : vector<16x1xf32>
    %95 = vector.broadcast %94 : vector<16x1xf32> to vector<16x32xf32>
    %96 = arith.mulf %91, %95 : vector<16x32xf32>
    %97 = vector.broadcast %77 : vector<1x32xf32> to vector<16x32xf32>
    %98 = arith.mulf %96, %97 : vector<16x32xf32>
    %99 = vector.broadcast %78 : vector<1x32xf32> to vector<16x32xf32>
    %100 = arith.addf %98, %99 : vector<16x32xf32>
    %101 = arith.truncf %100 : vector<16x32xf32> to vector<16x32xbf16>
    %c0_32 = arith.constant 0 : index
    %c0_33 = arith.constant 0 : index
    %102 = vector.load %arg11[%c0_32, %c0_33] : memref<32x128xbf16, #tpu.memory_space<vmem>>, vector<32x128xbf16>
    %cst_34 = arith.constant dense<0.000000e+00> : vector<16x128xf32>
    %103 = tpu.matmul %101, %102, %cst_34 {dimension_numbers = #tpu.dot_dimension_numbers<[1], [0], [0], [1], [0, 0, 1, 1], [], []>} : vector<16x32xbf16>, vector<32x128xbf16>, vector<16x128xf32> -> vector<16x128xf32>
    %c0_35 = arith.constant 0 : index
    %c0_36 = arith.constant 0 : index
    %104 = vector.load %arg12[%c0_35, %c0_36] : memref<1x128xf32, #tpu.memory_space<vmem>>, vector<1x128xf32>
    %105 = vector.broadcast %104 : vector<1x128xf32> to vector<16x128xf32>
    %106 = arith.addf %103, %105 : vector<16x128xf32>
    %cst_37 = arith.constant 1.702000e+00 : f32
    %107 = vector.broadcast %cst_37 : f32 to vector<16x128xf32>
    %108 = arith.mulf %107, %106 : vector<16x128xf32>
    %109 = arith.negf %108 : vector<16x128xf32>
    %110 = math.exp %109 : vector<16x128xf32>
    %cst_38 = arith.constant 1.000000e+00 : f32
    %111 = vector.broadcast %cst_38 : f32 to vector<16x128xf32>
    %112 = arith.addf %111, %110 : vector<16x128xf32>
    %113 = arith.divf %111, %112 : vector<16x128xf32>
    %114 = arith.mulf %106, %113 : vector<16x128xf32>
    %115 = arith.truncf %114 : vector<16x128xf32> to vector<16x128xbf16>
    %c0_39 = arith.constant 0 : index
    %c0_40 = arith.constant 0 : index
    %116 = vector.load %arg13[%c0_39, %c0_40] : memref<128x32xbf16, #tpu.memory_space<vmem>>, vector<128x32xbf16>
    %cst_41 = arith.constant dense<0.000000e+00> : vector<16x32xf32>
    %117 = tpu.matmul %115, %116, %cst_41 {dimension_numbers = #tpu.dot_dimension_numbers<[1], [0], [0], [1], [0, 0, 1, 1], [], []>} : vector<16x128xbf16>, vector<128x32xbf16>, vector<16x32xf32> -> vector<16x32xf32>
    %c0_42 = arith.constant 0 : index
    %c0_43 = arith.constant 0 : index
    %118 = vector.load %arg14[%c0_42, %c0_43] : memref<1x32xf32, #tpu.memory_space<vmem>>, vector<1x32xf32>
    %119 = vector.broadcast %118 : vector<1x32xf32> to vector<16x32xf32>
    %120 = arith.addf %117, %119 : vector<16x32xf32>
    %121 = arith.addf %76, %120 : vector<16x32xf32>
    %122 = vector.shape_cast %121 : vector<16x32xf32> to vector<2x8x32xf32>
    %c0_44 = arith.constant 0 : index
    %c0_45 = arith.constant 0 : index
    %c0_46 = arith.constant 0 : index
    %123 = vector.load %arg15[%c0_44, %c0_45, %c0_46] : memref<2x8x32xf32, #tpu.memory_space<vmem>>, vector<2x8x32xf32>
    tpu.vector_store %arg15[%c0_44, %c0_45, %c0_46], %122 {strides = array<i32>} : memref<2x8x32xf32, #tpu.memory_space<vmem>>, vector<2x8x32xf32>,
    return
  }
  func.func @transform_0(%arg0: i32) -> (i32, i32, i32) {
    %c0_i32 = arith.constant 0 : i32
    %c0_i32_0 = arith.constant 0 : i32
    %c0_i32_1 = arith.constant 0 : i32
    return %arg0, %c0_i32, %c0_i32_0 : i32, i32, i32
  }
  func.func @transform_1(%arg0: i32) -> (i32, i32, i32) {
    %c0_i32 = arith.constant 0 : i32
    %c0_i32_0 = arith.constant 0 : i32
    %c0_i32_1 = arith.constant 0 : i32
    return %arg0, %c0_i32, %c0_i32_0 : i32, i32, i32
  }
  func.func @transform_2(%arg0: i32) -> (i32, i32) {
    %c0_i32 = arith.constant 0 : i32
    %c0_i32_0 = arith.constant 0 : i32
    %c0_i32_1 = arith.constant 0 : i32
    return %c0_i32, %c0_i32_0 : i32, i32
  }
  func.func @transform_3(%arg0: i32) -> (i32, i32) {
    %c0_i32 = arith.constant 0 : i32
    %c0_i32_0 = arith.constant 0 : i32
    %c0_i32_1 = arith.constant 0 : i32
    return %c0_i32, %c0_i32_0 : i32, i32
  }
  func.func @transform_4(%arg0: i32) -> (i32, i32) {
    %c0_i32 = arith.constant 0 : i32
    %c0_i32_0 = arith.constant 0 : i32
    %c0_i32_1 = arith.constant 0 : i32
    return %c0_i32, %c0_i32_0 : i32, i32
  }
  func.func @transform_5(%arg0: i32) -> (i32, i32) {
    %c0_i32 = arith.constant 0 : i32
    %c0_i32_0 = arith.constant 0 : i32
    %c0_i32_1 = arith.constant 0 : i32
    return %c0_i32, %c0_i32_0 : i32, i32
  }
  func.func @transform_6(%arg0: i32) -> (i32, i32) {
    %c0_i32 = arith.constant 0 : i32
    %c0_i32_0 = arith.constant 0 : i32
    %c0_i32_1 = arith.constant 0 : i32
    return %c0_i32, %c0_i32_0 : i32, i32
  }
  func.func @transform_7(%arg0: i32) -> (i32, i32) {
    %c0_i32 = arith.constant 0 : i32
    %c0_i32_0 = arith.constant 0 : i32
    %c0_i32_1 = arith.constant 0 : i32
    return %c0_i32, %c0_i32_0 : i32, i32
  }
  func.func @transform_8(%arg0: i32) -> (i32, i32) {
    %c0_i32 = arith.constant 0 : i32
    %c0_i32_0 = arith.constant 0 : i32
    %c0_i32_1 = arith.constant 0 : i32
    return %c0_i32, %c0_i32_0 : i32, i32
  }
  func.func @transform_9(%arg0: i32) -> (i32, i32) {
    %c0_i32 = arith.constant 0 : i32
    %c0_i32_0 = arith.constant 0 : i32
    %c0_i32_1 = arith.constant 0 : i32
    return %c0_i32, %c0_i32_0 : i32, i32
  }
  func.func @transform_10(%arg0: i32) -> (i32, i32) {
    %c0_i32 = arith.constant 0 : i32
    %c0_i32_0 = arith.constant 0 : i32
    %c0_i32_1 = arith.constant 0 : i32
    return %c0_i32, %c0_i32_0 : i32, i32
  }
  func.func @transform_11(%arg0: i32) -> (i32, i32) {
    %c0_i32 = arith.constant 0 : i32
    %c0_i32_0 = arith.constant 0 : i32
    %c0_i32_1 = arith.constant 0 : i32
    return %c0_i32, %c0_i32_0 : i32, i32
  }
  func.func @transform_12(%arg0: i32) -> (i32, i32) {
    %c0_i32 = arith.constant 0 : i32
    %c0_i32_0 = arith.constant 0 : i32
    %c0_i32_1 = arith.constant 0 : i32
    return %c0_i32, %c0_i32_0 : i32, i32
  }
  func.func @transform_13(%arg0: i32) -> (i32, i32) {
    %c0_i32 = arith.constant 0 : i32
    %c0_i32_0 = arith.constant 0 : i32
    %c0_i32_1 = arith.constant 0 : i32
    return %c0_i32, %c0_i32_0 : i32, i32
  }
  func.func @transform_14(%arg0: i32) -> (i32, i32, i32) {
    %c0_i32 = arith.constant 0 : i32
    %c0_i32_0 = arith.constant 0 : i32
    %c0_i32_1 = arith.constant 0 : i32
    return %arg0, %c0_i32, %c0_i32_0 : i32, i32, i32
  }
}

module attributes {stable_mosaic.version = 11 : i64} {
  func.func @cross_modality_attention_kernel(%arg0: i32, %arg1: memref<2x8x32xf32, #tpu.memory_space<vmem>>, %arg2: memref<2x8x32xbf16, #tpu.memory_space<vmem>>, %arg3: memref<32x32xbf16, #tpu.memory_space<vmem>>, %arg4: memref<1x32xf32, #tpu.memory_space<vmem>>, %arg5: memref<32x64xbf16, #tpu.memory_space<vmem>>, %arg6: memref<1x64xf32, #tpu.memory_space<vmem>>, %arg7: memref<32x32xbf16, #tpu.memory_space<vmem>>, %arg8: memref<1x32xf32, #tpu.memory_space<vmem>>, %arg9: memref<1x32xf32, #tpu.memory_space<vmem>>, %arg10: memref<1x32xf32, #tpu.memory_space<vmem>>, %arg11: memref<32x128xbf16, #tpu.memory_space<vmem>>, %arg12: memref<1x128xf32, #tpu.memory_space<vmem>>, %arg13: memref<128x32xbf16, #tpu.memory_space<vmem>>, %arg14: memref<1x32xf32, #tpu.memory_space<vmem>>, %arg15: memref<2x8x32xf32, #tpu.memory_space<vmem>>) attributes {dimension_semantics = [#tpu.dimension_semantics<parallel>], iteration_bounds = array<i64: 2>, scalar_prefetch = 0 : i64, scratch_operands = 0 : i64, tpu.core_type = #tpu.core_type<tc>, window_params = [{transform_indices = @transform_0, window_bounds = array<i64: 2, 8, 32>}, {transform_indices = @transform_1, window_bounds = array<i64: 2, 8, 32>}, {pipeline_mode = #tpu.pipeline_mode<synchronous>, transform_indices = @transform_2, window_bounds = array<i64: 32, 32>}, {pipeline_mode = #tpu.pipeline_mode<synchronous>, transform_indices = @transform_3, window_bounds = array<i64: 1, 32>}, {pipeline_mode = #tpu.pipeline_mode<synchronous>, transform_indices = @transform_4, window_bounds = array<i64: 32, 64>}, {pipeline_mode = #tpu.pipeline_mode<synchronous>, transform_indices = @transform_5, window_bounds = array<i64: 1, 64>}, {pipeline_mode = #tpu.pipeline_mode<synchronous>, transform_indices = @transform_6, window_bounds = array<i64: 32, 32>}, {pipeline_mode = #tpu.pipeline_mode<synchronous>, transform_indices = @transform_7, window_bounds = array<i64: 1, 32>}, {pipeline_mode = #tpu.pipeline_mode<synchronous>, transform_indices = @transform_8, window_bounds = array<i64: 1, 32>}, {pipeline_mode = #tpu.pipeline_mode<synchronous>, transform_indices = @transform_9, window_bounds = array<i64: 1, 32>}, {pipeline_mode = #tpu.pipeline_mode<synchronous>, transform_indices = @transform_10, window_bounds = array<i64: 32, 128>}, {pipeline_mode = #tpu.pipeline_mode<synchronous>, transform_indices = @transform_11, window_bounds = array<i64: 1, 128>}, {pipeline_mode = #tpu.pipeline_mode<synchronous>, transform_indices = @transform_12, window_bounds = array<i64: 128, 32>}, {pipeline_mode = #tpu.pipeline_mode<synchronous>, transform_indices = @transform_13, window_bounds = array<i64: 1, 32>}, {transform_indices = @transform_14, window_bounds = array<i64: 2, 8, 32>}]} {
    %c0 = arith.constant 0 : index
    %c0_0 = arith.constant 0 : index
    %c0_1 = arith.constant 0 : index
    %0 = vector.load %arg1[%c0, %c0_0, %c0_1] : memref<2x8x32xf32, #tpu.memory_space<vmem>>, vector<2x8x32xf32>
    %1 = vector.shape_cast %0 : vector<2x8x32xf32> to vector<16x32xf32>
    %c0_2 = arith.constant 0 : index
    %c0_3 = arith.constant 0 : index
    %c0_4 = arith.constant 0 : index
    %2 = vector.load %arg2[%c0_2, %c0_3, %c0_4] : memref<2x8x32xbf16, #tpu.memory_space<vmem>>, vector<2x8x32xbf16>
    %3 = vector.shape_cast %2 : vector<2x8x32xbf16> to vector<16x32xbf16>
    %4 = arith.truncf %1 : vector<16x32xf32> to vector<16x32xbf16>
    %c0_5 = arith.constant 0 : index
    %c0_6 = arith.constant 0 : index
    %5 = vector.load %arg3[%c0_5, %c0_6] : memref<32x32xbf16, #tpu.memory_space<vmem>>, vector<32x32xbf16>
    %cst = arith.constant dense<0.000000e+00> : vector<16x32xf32>
    %6 = tpu.matmul %4, %5, %cst {dimension_numbers = #tpu.dot_dimension_numbers<[1], [0], [0], [1], [0, 0, 1, 1], [], []>} : vector<16x32xbf16>, vector<32x32xbf16>, vector<16x32xf32> -> vector<16x32xf32>
    %c0_7 = arith.constant 0 : index
    %c0_8 = arith.constant 0 : index
    %7 = vector.load %arg4[%c0_7, %c0_8] : memref<1x32xf32, #tpu.memory_space<vmem>>, vector<1x32xf32>
    %8 = vector.broadcast %7 : vector<1x32xf32> to vector<16x32xf32>
    %9 = arith.addf %6, %8 : vector<16x32xf32>
    %10 = arith.truncf %9 : vector<16x32xf32> to vector<16x32xbf16>
    %c0_9 = arith.constant 0 : index
    %c0_10 = arith.constant 0 : index
    %11 = vector.load %arg5[%c0_9, %c0_10] : memref<32x64xbf16, #tpu.memory_space<vmem>>, vector<32x64xbf16>
    %cst_11 = arith.constant dense<0.000000e+00> : vector<16x64xf32>
    %12 = tpu.matmul %3, %11, %cst_11 {dimension_numbers = #tpu.dot_dimension_numbers<[1], [0], [0], [1], [0, 0, 1, 1], [], []>} : vector<16x32xbf16>, vector<32x64xbf16>, vector<16x64xf32> -> vector<16x64xf32>
    %c0_12 = arith.constant 0 : index
    %c0_13 = arith.constant 0 : index
    %13 = vector.load %arg6[%c0_12, %c0_13] : memref<1x64xf32, #tpu.memory_space<vmem>>, vector<1x64xf32>
    %14 = vector.broadcast %13 : vector<1x64xf32> to vector<16x64xf32>
    %15 = arith.addf %12, %14 : vector<16x64xf32>
    %16 = arith.truncf %15 : vector<16x64xf32> to vector<16x64xbf16>
    %17 = vector.extract_strided_slice %10 {offsets = [0, 0], sizes = [16, 8], strides = [1, 1]} : vector<16x32xbf16> to vector<16x8xbf16>
    %18 = vector.shape_cast %17 : vector<16x8xbf16> to vector<1x16x8xbf16>
    %19 = vector.extract_strided_slice %10 {offsets = [0, 8], sizes = [16, 8], strides = [1, 1]} : vector<16x32xbf16> to vector<16x8xbf16>
    %20 = vector.shape_cast %19 : vector<16x8xbf16> to vector<1x16x8xbf16>
    %21 = vector.extract_strided_slice %10 {offsets = [0, 16], sizes = [16, 8], strides = [1, 1]} : vector<16x32xbf16> to vector<16x8xbf16>
    %22 = vector.shape_cast %21 : vector<16x8xbf16> to vector<1x16x8xbf16>
    %23 = vector.extract_strided_slice %10 {offsets = [0, 24], sizes = [16, 8], strides = [1, 1]} : vector<16x32xbf16> to vector<16x8xbf16>
    %24 = vector.shape_cast %23 : vector<16x8xbf16> to vector<1x16x8xbf16>
    %25 = tpu.concatenate %18, %20, %22, %24 in 0 : vector<1x16x8xbf16>, vector<1x16x8xbf16>, vector<1x16x8xbf16>, vector<1x16x8xbf16> -> vector<4x16x8xbf16>
    %26 = vector.shape_cast %25 : vector<4x16x8xbf16> to vector<8x8x8xbf16>
    %27 = vector.extract_strided_slice %16 {offsets = [0, 0], sizes = [16, 8], strides = [1, 1]} : vector<16x64xbf16> to vector<16x8xbf16>
    %28 = vector.shape_cast %27 : vector<16x8xbf16> to vector<1x16x8xbf16>
    %29 = vector.extract_strided_slice %16 {offsets = [0, 8], sizes = [16, 8], strides = [1, 1]} : vector<16x64xbf16> to vector<16x8xbf16>
    %30 = vector.shape_cast %29 : vector<16x8xbf16> to vector<1x16x8xbf16>
    %31 = vector.extract_strided_slice %16 {offsets = [0, 16], sizes = [16, 8], strides = [1, 1]} : vector<16x64xbf16> to vector<16x8xbf16>
    %32 = vector.shape_cast %31 : vector<16x8xbf16> to vector<1x16x8xbf16>
    %33 = vector.extract_strided_slice %16 {offsets = [0, 24], sizes = [16, 8], strides = [1, 1]} : vector<16x64xbf16> to vector<16x8xbf16>
    %34 = vector.shape_cast %33 : vector<16x8xbf16> to vector<1x16x8xbf16>
    %35 = tpu.concatenate %28, %30, %32, %34 in 0 : vector<1x16x8xbf16>, vector<1x16x8xbf16>, vector<1x16x8xbf16>, vector<1x16x8xbf16> -> vector<4x16x8xbf16>
    %36 = vector.shape_cast %35 : vector<4x16x8xbf16> to vector<8x8x8xbf16>
    %37 = vector.extract_strided_slice %16 {offsets = [0, 32], sizes = [16, 8], strides = [1, 1]} : vector<16x64xbf16> to vector<16x8xbf16>
    %38 = vector.shape_cast %37 : vector<16x8xbf16> to vector<1x16x8xbf16>
    %39 = vector.extract_strided_slice %16 {offsets = [0, 40], sizes = [16, 8], strides = [1, 1]} : vector<16x64xbf16> to vector<16x8xbf16>
    %40 = vector.shape_cast %39 : vector<16x8xbf16> to vector<1x16x8xbf16>
    %41 = vector.extract_strided_slice %16 {offsets = [0, 48], sizes = [16, 8], strides = [1, 1]} : vector<16x64xbf16> to vector<16x8xbf16>
    %42 = vector.shape_cast %41 : vector<16x8xbf16> to vector<1x16x8xbf16>
    %43 = vector.extract_strided_slice %16 {offsets = [0, 56], sizes = [16, 8], strides = [1, 1]} : vector<16x64xbf16> to vector<16x8xbf16>
    %44 = vector.shape_cast %43 : vector<16x8xbf16> to vector<1x16x8xbf16>
    %45 = tpu.concatenate %38, %40, %42, %44 in 0 : vector<1x16x8xbf16>, vector<1x16x8xbf16>, vector<1x16x8xbf16>, vector<1x16x8xbf16> -> vector<4x16x8xbf16>
    %46 = vector.shape_cast %45 : vector<4x16x8xbf16> to vector<8x8x8xbf16>
    "tpu.trace_start"() <{level = 10 : i32, message = "bld,bsd->bls"}> : () -> ()
    %cst_14 = arith.constant dense<0.000000e+00> : vector<8x8x8xf32>
    %47 = tpu.matmul %26, %36, %cst_14 {dimension_numbers = #tpu.dot_dimension_numbers<[2], [2], [1], [1], [0, 0, 0, 1, 1, 1], [0], [0]>} : vector<8x8x8xbf16>, vector<8x8x8xbf16>, vector<8x8x8xf32> -> vector<8x8x8xf32>
    "tpu.trace_stop"() : () -> ()
    %cst_15 = arith.constant dense<0xFF800000> : vector<8x8xf32>
    %48 = vector.multi_reduction <maximumf>, %47, %cst_15 [2] : vector<8x8x8xf32> to vector<8x8xf32>
    %49 = vector.shape_cast %48 : vector<8x8xf32> to vector<8x8x1xf32>
    %50 = vector.broadcast %49 : vector<8x8x1xf32> to vector<8x8x8xf32>
    %51 = arith.subf %47, %50 : vector<8x8x8xf32>
    %52 = math.exp %51 : vector<8x8x8xf32>
    %cst_16 = arith.constant dense<0.000000e+00> : vector<8x8xf32>
    %53 = vector.multi_reduction <add>, %52, %cst_16 [2] : vector<8x8x8xf32> to vector<8x8xf32>
    %54 = vector.shape_cast %53 : vector<8x8xf32> to vector<8x8x1xf32>
    %55 = tpu.reciprocal %54 {approx = true} : vector<8x8x1xf32> -> vector<8x8x1xf32>
    %56 = vector.broadcast %55 : vector<8x8x1xf32> to vector<8x8x8xf32>
    %57 = arith.mulf %52, %56 : vector<8x8x8xf32>
    %58 = arith.truncf %57 : vector<8x8x8xf32> to vector<8x8x8xbf16>
    "tpu.trace_start"() <{level = 10 : i32, message = "bls,bsd->bld"}> : () -> ()
    %cst_17 = arith.constant dense<0.000000e+00> : vector<8x8x8xf32>
    %59 = tpu.matmul %58, %46, %cst_17 {dimension_numbers = #tpu.dot_dimension_numbers<[2], [1], [1], [2], [0, 0, 0, 1, 1, 2], [0], [0]>} : vector<8x8x8xbf16>, vector<8x8x8xbf16>, vector<8x8x8xf32> -> vector<8x8x8xf32>
    "tpu.trace_stop"() : () -> ()
    %60 = vector.shape_cast %59 : vector<8x8x8xf32> to vector<4x16x8xf32>
    %61 = arith.truncf %60 : vector<4x16x8xf32> to vector<4x16x8xbf16>
    %62 = vector.extract_strided_slice %61 {offsets = [0, 0, 0], sizes = [1, 16, 8], strides = [1, 1, 1]} : vector<4x16x8xbf16> to vector<1x16x8xbf16>
    %63 = vector.shape_cast %62 : vector<1x16x8xbf16> to vector<16x8xbf16>
    %64 = vector.extract_strided_slice %61 {offsets = [1, 0, 0], sizes = [1, 16, 8], strides = [1, 1, 1]} : vector<4x16x8xbf16> to vector<1x16x8xbf16>
    %65 = vector.shape_cast %64 : vector<1x16x8xbf16> to vector<16x8xbf16>
    %66 = vector.extract_strided_slice %61 {offsets = [2, 0, 0], sizes = [1, 16, 8], strides = [1, 1, 1]} : vector<4x16x8xbf16> to vector<1x16x8xbf16>
    %67 = vector.shape_cast %66 : vector<1x16x8xbf16> to vector<16x8xbf16>
    %68 = vector.extract_strided_slice %61 {offsets = [3, 0, 0], sizes = [1, 16, 8], strides = [1, 1, 1]} : vector<4x16x8xbf16> to vector<1x16x8xbf16>
    %69 = vector.shape_cast %68 : vector<1x16x8xbf16> to vector<16x8xbf16>
    %70 = tpu.concatenate %63, %65, %67, %69 in 1 : vector<16x8xbf16>, vector<16x8xbf16>, vector<16x8xbf16>, vector<16x8xbf16> -> vector<16x32xbf16>
    %c0_18 = arith.constant 0 : index
    %c0_19 = arith.constant 0 : index
    %71 = vector.load %arg7[%c0_18, %c0_19] : memref<32x32xbf16, #tpu.memory_space<vmem>>, vector<32x32xbf16>
    %cst_20 = arith.constant dense<0.000000e+00> : vector<16x32xf32>
    %72 = tpu.matmul %70, %71, %cst_20 {dimension_numbers = #tpu.dot_dimension_numbers<[1], [0], [0], [1], [0, 0, 1, 1], [], []>} : vector<16x32xbf16>, vector<32x32xbf16>, vector<16x32xf32> -> vector<16x32xf32>
    %c0_21 = arith.constant 0 : index
    %c0_22 = arith.constant 0 : index
    %73 = vector.load %arg8[%c0_21, %c0_22] : memref<1x32xf32, #tpu.memory_space<vmem>>, vector<1x32xf32>
    %74 = vector.broadcast %73 : vector<1x32xf32> to vector<16x32xf32>
    %75 = arith.addf %72, %74 : vector<16x32xf32>
    %76 = arith.addf %1, %75 : vector<16x32xf32>
    %c0_23 = arith.constant 0 : index
    %c0_24 = arith.constant 0 : index
    %77 = vector.load %arg9[%c0_23, %c0_24] : memref<1x32xf32, #tpu.memory_space<vmem>>, vector<1x32xf32>
    %c0_25 = arith.constant 0 : index
    %c0_26 = arith.constant 0 : index
    %78 = vector.load %arg10[%c0_25, %c0_26] : memref<1x32xf32, #tpu.memory_space<vmem>>, vector<1x32xf32>
    %cst_27 = arith.constant dense<0.000000e+00> : vector<16xf32>
    %79 = vector.multi_reduction <add>, %76, %cst_27 [1] : vector<16x32xf32> to vector<16xf32>
    %80 = vector.shape_cast %79 : vector<16xf32> to vector<16x1xf32>
    %cst_28 = arith.constant 3.200000e+01 : f32
    %81 = vector.broadcast %cst_28 : f32 to vector<16x1xf32>
    %82 = arith.divf %80, %81 : vector<16x1xf32>
    %83 = vector.broadcast %82 : vector<16x1xf32> to vector<16x32xf32>
    %84 = arith.subf %76, %83 : vector<16x32xf32>
    %85 = arith.mulf %84, %84 : vector<16x32xf32>
    %cst_29 = arith.constant dense<0.000000e+00> : vector<16xf32>
    %86 = vector.multi_reduction <add>, %85, %cst_29 [1] : vector<16x32xf32> to vector<16xf32>
    %87 = vector.shape_cast %86 : vector<16xf32> to vector<16x1xf32>
    %cst_30 = arith.constant 3.200000e+01 : f32
    %88 = vector.broadcast %cst_30 : f32 to vector<16x1xf32>
    %89 = arith.divf %87, %88 : vector<16x1xf32>
    %90 = vector.broadcast %82 : vector<16x1xf32> to vector<16x32xf32>
    %91 = arith.subf %76, %90 : vector<16x32xf32>
    %cst_31 = arith.constant 9.99999974E-6 : f32
    %92 = vector.broadcast %cst_31 : f32 to vector<16x1xf32>
    %93 = arith.addf %89, %92 : vector<16x1xf32>
    %94 = math.rsqrt %93 : vector<16x1xf32>
    %95 = vector.broadcast %94 : vector<16x1xf32> to vector<16x32xf32>
    %96 = arith.mulf %91, %95 : vector<16x32xf32>
    %97 = vector.broadcast %77 : vector<1x32xf32> to vector<16x32xf32>
    %98 = arith.mulf %96, %97 : vector<16x32xf32>
    %99 = vector.broadcast %78 : vector<1x32xf32> to vector<16x32xf32>
    %100 = arith.addf %98, %99 : vector<16x32xf32>
    %101 = arith.truncf %100 : vector<16x32xf32> to vector<16x32xbf16>
    %c0_32 = arith.constant 0 : index
    %c0_33 = arith.constant 0 : index
    %102 = vector.load %arg11[%c0_32, %c0_33] : memref<32x128xbf16, #tpu.memory_space<vmem>>, vector<32x128xbf16>
    %cst_34 = arith.constant dense<0.000000e+00> : vector<16x128xf32>
    %103 = tpu.matmul %101, %102, %cst_34 {dimension_numbers = #tpu.dot_dimension_numbers<[1], [0], [0], [1], [0, 0, 1, 1], [], []>} : vector<16x32xbf16>, vector<32x128xbf16>, vector<16x128xf32> -> vector<16x128xf32>
    %c0_35 = arith.constant 0 : index
    %c0_36 = arith.constant 0 : index
    %104 = vector.load %arg12[%c0_35, %c0_36] : memref<1x128xf32, #tpu.memory_space<vmem>>, vector<1x128xf32>
    %105 = vector.broadcast %104 : vector<1x128xf32> to vector<16x128xf32>
    %106 = arith.addf %103, %105 : vector<16x128xf32>
    %cst_37 = arith.constant 1.702000e+00 : f32
    %107 = vector.broadcast %cst_37 : f32 to vector<16x128xf32>
    %108 = arith.mulf %107, %106 : vector<16x128xf32>
    %109 = arith.negf %108 : vector<16x128xf32>
    %110 = math.exp %109 : vector<16x128xf32>
    %cst_38 = arith.constant 1.000000e+00 : f32
    %111 = vector.broadcast %cst_38 : f32 to vector<16x128xf32>
    %112 = arith.addf %111, %110 : vector<16x128xf32>
    %113 = arith.divf %111, %112 : vector<16x128xf32>
    %114 = arith.mulf %106, %113 : vector<16x128xf32>
    %115 = arith.truncf %114 : vector<16x128xf32> to vector<16x128xbf16>
    %c0_39 = arith.constant 0 : index
    %c0_40 = arith.constant 0 : index
    %116 = vector.load %arg13[%c0_39, %c0_40] : memref<128x32xbf16, #tpu.memory_space<vmem>>, vector<128x32xbf16>
    %cst_41 = arith.constant dense<0.000000e+00> : vector<16x32xf32>
    %117 = tpu.matmul %115, %116, %cst_41 {dimension_numbers = #tpu.dot_dimension_numbers<[1], [0], [0], [1], [0, 0, 1, 1], [], []>} : vector<16x128xbf16>, vector<128x32xbf16>, vector<16x32xf32> -> vector<16x32xf32>
    %c0_42 = arith.constant 0 : index
    %c0_43 = arith.constant 0 : index
    %118 = vector.load %arg14[%c0_42, %c0_43] : memref<1x32xf32, #tpu.memory_space<vmem>>, vector<1x32xf32>
    %119 = vector.broadcast %118 : vector<1x32xf32> to vector<16x32xf32>
    %120 = arith.addf %117, %119 : vector<16x32xf32>
    %121 = arith.addf %76, %120 : vector<16x32xf32>
    %122 = vector.shape_cast %121 : vector<16x32xf32> to vector<2x8x32xf32>
    %c0_44 = arith.constant 0 : index
    %c0_45 = arith.constant 0 : index
    %c0_46 = arith.constant 0 : index
    %123 = vector.load %arg15[%c0_44, %c0_45, %c0_46] : memref<2x8x32xf32, #tpu.memory_space<vmem>>, vector<2x8x32xf32>
    tpu.vector_store %arg15[%c0_44, %c0_45, %c0_46], %122 {strides = array<i32>} : memref<2x8x32xf32, #tpu.memory_space<vmem>>, vector<2x8x32xf32>,
    return
  }
  func.func @transform_0(%arg0: i32) -> (i32, i32, i32) {
    %c0_i32 = arith.constant 0 : i32
    %c0_i32_0 = arith.constant 0 : i32
    %c0_i32_1 = arith.constant 0 : i32
    return %arg0, %c0_i32, %c0_i32_0 : i32, i32, i32
  }
  func.func @transform_1(%arg0: i32) -> (i32, i32, i32) {
    %c0_i32 = arith.constant 0 : i32
    %c0_i32_0 = arith.constant 0 : i32
    %c0_i32_1 = arith.constant 0 : i32
    return %arg0, %c0_i32, %c0_i32_0 : i32, i32, i32
  }
  func.func @transform_2(%arg0: i32) -> (i32, i32) {
    %c0_i32 = arith.constant 0 : i32
    %c0_i32_0 = arith.constant 0 : i32
    %c0_i32_1 = arith.constant 0 : i32
    return %c0_i32, %c0_i32_0 : i32, i32
  }
  func.func @transform_3(%arg0: i32) -> (i32, i32) {
    %c0_i32 = arith.constant 0 : i32
    %c0_i32_0 = arith.constant 0 : i32
    %c0_i32_1 = arith.constant 0 : i32
    return %c0_i32, %c0_i32_0 : i32, i32
  }
  func.func @transform_4(%arg0: i32) -> (i32, i32) {
    %c0_i32 = arith.constant 0 : i32
    %c0_i32_0 = arith.constant 0 : i32
    %c0_i32_1 = arith.constant 0 : i32
    return %c0_i32, %c0_i32_0 : i32, i32
  }
  func.func @transform_5(%arg0: i32) -> (i32, i32) {
    %c0_i32 = arith.constant 0 : i32
    %c0_i32_0 = arith.constant 0 : i32
    %c0_i32_1 = arith.constant 0 : i32
    return %c0_i32, %c0_i32_0 : i32, i32
  }
  func.func @transform_6(%arg0: i32) -> (i32, i32) {
    %c0_i32 = arith.constant 0 : i32
    %c0_i32_0 = arith.constant 0 : i32
    %c0_i32_1 = arith.constant 0 : i32
    return %c0_i32, %c0_i32_0 : i32, i32
  }
  func.func @transform_7(%arg0: i32) -> (i32, i32) {
    %c0_i32 = arith.constant 0 : i32
    %c0_i32_0 = arith.constant 0 : i32
    %c0_i32_1 = arith.constant 0 : i32
    return %c0_i32, %c0_i32_0 : i32, i32
  }
  func.func @transform_8(%arg0: i32) -> (i32, i32) {
    %c0_i32 = arith.constant 0 : i32
    %c0_i32_0 = arith.constant 0 : i32
    %c0_i32_1 = arith.constant 0 : i32
    return %c0_i32, %c0_i32_0 : i32, i32
  }
  func.func @transform_9(%arg0: i32) -> (i32, i32) {
    %c0_i32 = arith.constant 0 : i32
    %c0_i32_0 = arith.constant 0 : i32
    %c0_i32_1 = arith.constant 0 : i32
    return %c0_i32, %c0_i32_0 : i32, i32
  }
  func.func @transform_10(%arg0: i32) -> (i32, i32) {
    %c0_i32 = arith.constant 0 : i32
    %c0_i32_0 = arith.constant 0 : i32
    %c0_i32_1 = arith.constant 0 : i32
    return %c0_i32, %c0_i32_0 : i32, i32
  }
  func.func @transform_11(%arg0: i32) -> (i32, i32) {
    %c0_i32 = arith.constant 0 : i32
    %c0_i32_0 = arith.constant 0 : i32
    %c0_i32_1 = arith.constant 0 : i32
    return %c0_i32, %c0_i32_0 : i32, i32
  }
  func.func @transform_12(%arg0: i32) -> (i32, i32) {
    %c0_i32 = arith.constant 0 : i32
    %c0_i32_0 = arith.constant 0 : i32
    %c0_i32_1 = arith.constant 0 : i32
    return %c0_i32, %c0_i32_0 : i32, i32
  }
  func.func @transform_13(%arg0: i32) -> (i32, i32) {
    %c0_i32 = arith.constant 0 : i32
    %c0_i32_0 = arith.constant 0 : i32
    %c0_i32_1 = arith.constant 0 : i32
    return %c0_i32, %c0_i32_0 : i32, i32
  }
  func.func @transform_14(%arg0: i32) -> (i32, i32, i32) {
    %c0_i32 = arith.constant 0 : i32
    %c0_i32_0 = arith.constant 0 : i32
    %c0_i32_1 = arith.constant 0 : i32
    return %arg0, %c0_i32, %c0_i32_0 : i32, i32, i32
  }
}

</mosaic_0001>

<bundles_post_ra>
// kernel: tpu_custom_call.1
= control target key start
LH: loop header
LB: loop body
LE: loop exit
PB: predicated region body
PF: predicated region fallthrough
CT: control target
= control target key end

     0   :  { %19 = vsyncpa [#allocation3], 0  ;;  %s3134_s0 = inlined_call_operand.vmem [shape: f32[4,8,32], index: 0, kind: input, shape index: {}]   ;;  %s3135_s1 = inlined_call_operand.vmem [shape: bf16[4,8,32], index: 1, kind: input, shape index: {}]   ;;  %s3136_s2 = inlined_call_operand.vmem [shape: bf16[32,32], index: 2, kind: input, shape index: {}]   ;;  %s3137_s3 = inlined_call_operand.vmem [shape: f32[1,32], index: 3, kind: input, shape index: {}]   ;;  %s3138_s4 = inlined_call_operand.vmem [shape: bf16[32,64], index: 4, kind: input, shape index: {}]   ;;  %s3139_s5 = inlined_call_operand.vmem [shape: f32[1,64], index: 5, kind: input, shape index: {}]   ;;  %s3140_s6 = inlined_call_operand.hbm [shape: bf16[32,32], index: 6, kind: input, shape index: {}]   ;;  %s3141_s7 = inlined_call_operand.vmem [shape: f32[1,32], index: 7, kind: input, shape index: {}]   ;;  %s3142_s8 = inlined_call_operand.vmem [shape: f32[1,32], index: 8, kind: input, shape index: {}]   ;;  %s3143_s9 = inlined_call_operand.vmem [shape: f32[1,32], index: 9, kind: input, shape index: {}]   ;;  %s3144_s10 = inlined_call_operand.hbm [shape: bf16[32,128], index: 10, kind: input, shape index: {}]   ;;  %s3145_s11 = inlined_call_operand.hbm [shape: f32[1,128], index: 11, kind: input, shape index: {}]   ;;  %s3146_s12 = inlined_call_operand.vmem [shape: bf16[128,32], index: 12, kind: input, shape index: {}]   ;;  %s3147_s13 = inlined_call_operand.vmem [shape: f32[1,32], index: 13, kind: input, shape index: {}]   ;;  %s3148_s14 = inlined_call_operand.hbm [shape: f32[4,8,32], index: 14, kind: output, shape index: {}]  }
   0x1   :  { %20 = vsyncpa [#allocation6], 0 }
   0x2   :  { %21 = vsyncpa [#allocation4], 0 }
   0x3   :  { %23 = vsyncpa [#allocation4 + $0x1], 0  ;;  %s2702_s29 = smov 0   ;;  %s2704_s30 = smov 0  }
   0x4   :  { %s2706_s15 = smov 0   ;;  %s2708_s16 = smov 0  }
   0x5 LB: > { %3155 = sst [smem:[#allocation12_spill]] %s2597_s29  ;;  %s2723_s17 = sadd.s32 4294967295, %s2609_s16   ;;  %s2609_s16 = sphi %s2708_s16, %s3171_s16   ;;  %s2605_s15 = sphi %s2706_s15, %s3173_s15   ;;  %s2601_s30 = sphi %s2704_s30, %s3175_s30   ;;  %s2597_s29 = sphi %s2702_s29, %s3174_s29  }
   0x6   : > { %3156 = sst [smem:[#allocation13_spill]] %s2605_s15  ;;  %s2032_s18 = sadd.s32 4294967294, %s2609_s16  }
   0x7   : > { %s2727_s19 = sadd.s32 1, %s2609_s16   ;;  %s340_s20 = sadd.s32 1, %s2605_s15 }
   0x8   : > { %3157 = sst [smem:[#allocation14_spill]] %s2727_s19  ;;  %s337_s21 = ssub.s32 %s2609_s16, %s2727_s19 }
   0x9   : > { %p350_p0 = scmp.ne.s32.totalorder %s2605_s15, %s2601_s30  ;;  %p338_p1 = scmp.eq.s32.totalorder %s337_s21, 0 }
   0xa   : > { %p351_p2 = scmp.eq.s32.totalorder %s2723_s17, 1  ;;  %p356_p3 = scmp.ne.s32.totalorder %s2601_s30, %s2597_s29 }
   0xb   : > { %p357_p4 = scmp.eq.s32.totalorder %s2032_s18, 1  ;;  %p2033_p7 = scmp.ge.s32.totalorder %s2609_s16, 1 }
   0xc   : > { %s2738_s22 = scalar_select %p338_p1, %s2605_s15, %s340_s20  }
   0xd   : > { %p2740_p5 = por %p351_p2, %p350_p0  ;;  %p2744_p6 = por %p357_p4, %p356_p3 }
   0xe   : > { %3158 = sst [smem:[#allocation15_spill]] %s2738_s22  ;;  %p364_p8 = scmp.lt.s32.totalorder %s2609_s16, 3 }
   0xf   : > { %s3160_s24 = scalar_select %p2744_p6, 1, 0 }
  0x10   : > { %p3153_p9 = scmp.eq.s32.totalorder %s2723_s17, 0  ;;  %p2751_p10 = pnand %p2033_p7, %p364_p8 }
  0x11   : > { %3161 = sst [smem:[#allocation16_spill]] %s3160_s24  ;;  %s2611_s26 = smov [#allocation5]  }
  0x12   : > { %p2334_p11 = pneg %p2751_p10  ;;  %s410_s27 = sshll.u32 %s2611_s26, 4  ;;  %s411_s27 = int_to_ptr.vmem [resolvable:$true] %s410_s27 }
  0x13   : > { %s2612_s18 = smov [#allocation2]   ;;  %s2613_s21 = smov [#allocation7]  }
  0x14   : > { %p2759_p12 = pnand %p3153_p9, %p2334_p11  ;;  %s388_s20 = sshll.u32 %s2612_s18, 4  ;;  %s389_s20 = int_to_ptr.vmem [resolvable:$true] %s388_s20 }
  0x15   : > { %s424_s22 = sshll.u32 %s2613_s21, 4  ;;  %s2474_s15 = scalar_lea.vmem %s411_s27, 256  ;;  %s425_s22 = int_to_ptr.vmem [resolvable:$true] %s424_s22 }
  0x16   : > { %p2465_p13 = pneg %p2759_p12  ;;  %p2475_p0 = scmp.ne.s32.totalorder %s411_s27, %s2474_s15 }
  0x17   : > { %p2482_p3 = scmp.lt.s32.totalorder %s411_s27, %s411_s27  ;;  %p2483_p4 = scmp.lt.s32.totalorder %s2474_s15, %s2474_s15 }
  0x18   : > { %p2477_p1 = pnand %p2475_p0, %p2465_p13 }
  0x19   : > { %p2484_p7 = por %p2483_p4, %p2482_p3 }
  0x1a   : > { %p2478_p2 = pneg %p2477_p1 }
  0x1c   : > { %p2485_p8 = pnand %p2484_p7, %p2478_p2 }
  0x1e   : > { %2488 = shalt.err (!%p2485_p8)
}
  0x1f   : > { %s2614_s26 = smov 64   ;;  %s2615_s18 = smov 4  }
  0x20   : > { %2340 = dma.hbm_to_vmem [thread:$0]  (!%p2759_p12), %s3144_s10, 256, %s411_s27, [#allocation6], %s2614_s26, %s2614_s26, %s2615_s18  }
  0x21   : > { %s2500_s24 = scalar_lea.vmem %s389_s20, 256  ;;  %p2508_p9 = scmp.lt.s32.totalorder %s389_s20, %s389_s20 }
  0x22   : > { %p2501_p11 = scmp.ne.s32.totalorder %s389_s20, %s2500_s24  ;;  %p2509_p6 = scmp.lt.s32.totalorder %s2500_s24, %s2500_s24 }
  0x24   : > { %p2503_p0 = pnand %p2501_p11, %p2465_p13  ;;  %p2510_p3 = por %p2509_p6, %p2508_p9 }
  0x26   : > { %p2504_p1 = pneg %p2503_p0 }
  0x28   : > { %p2511_p2 = pnand %p2510_p3, %p2504_p1 }
  0x2a   : > { %2514 = shalt.err (!%p2511_p2)
}
  0x2b   : > { %2337 = dma.hbm_to_vmem [thread:$0]  (!%p2759_p12), %s3140_s6, 256, %s389_s20, [#allocation3], %s2614_s26, %s2614_s26, %s2615_s18  }
  0x2c   : > { %s2526_s19 = scalar_lea.vmem %s425_s22, 16  ;;  %s2533_s27 = scalar_lea.vmem %s425_s22, 32 }
  0x2d   : > { %p2527_p4 = scmp.ne.s32.totalorder %s425_s22, %s2526_s19  ;;  %p2534_p11 = scmp.lt.s32.totalorder %s425_s22, %s425_s22 }
  0x2e   : > { %p2535_p0 = scmp.lt.s32.totalorder %s2533_s27, %s2526_s19 }
  0x2f   : > { %p2529_p7 = pnand %p2527_p4, %p2465_p13 }
  0x30   : > { %p2536_p6 = por %p2535_p0, %p2534_p11 }
  0x31   : > { %p2530_p8 = pneg %p2529_p7 }
  0x33   : > { %p2537_p9 = pnand %p2536_p6, %p2530_p8 }
  0x35   : > { %2540 = shalt.err (!%p2537_p9)
}
  0x36   : > { %2343 = dma.hbm_to_vmem [thread:$0]  (!%p2759_p12), %s3145_s11, 16, %s425_s22, [#allocation6]  }
  0x37   : > { %461 = sbr.rel (%p2751_p10) target bundleno = 2255 (0x8cf), region = 76  ;;  %p3164_p1 = scmp.eq.s32.totalorder (!%p2751_p10), %s2723_s17, 0 }
  0x3c   : > { %2584 = dma.done.wait (%p3164_p1), [#allocation3], 256   ;;  %p3165_p13 = pmov %p3164_p1 }
  0x3d   : > { %p3166_p3 = pmov %p3164_p1 }
  0x3e   : > { %2586 = vsyncadd (%p3165_p13), [#allocation3], 4294967040 }
  0x3f   : > { %2588 = dma.done.wait (%p3166_p3), [#allocation6], 272   ;;  %p3167_p2 = pmov %p3164_p1 }
  0x40   : > { %s2043_s29 = sshll.u32 %s2723_s17, 1  ;;  %v2616_v0 = vmov 0.0   ;;  %vm2617_vm0 = vmmov 0   ;;  %v2402_v1 = vld [vmem:[%s3136_s2 + $0x8] sm:$0xff]   ;;  %v2403_v2 = vld [vmem:[%s3136_s2] sm:$0xff]   ;;  %vm562_vm1 = vcmask 261120  }
  0x41   : > { %2590 = vsyncadd (%p3167_p2), [#allocation6], 4294967024  ;;  %2172 = vmatprep.subr.bf16.mxu1 %v2616_v0  ;;  %2176 = vmatprep.mubr.msk.bf16.mxu1 %vm2617_vm0, %v2616_v0  ;;  %p521_p10 = scmp.lt.s32.totalorder %s2043_s29, 3  ;;  %v2404_v6 = vld [vmem:[%s3138_s4 + $0x8] sm:$0xff]   ;;  %v2405_v7 = vld [vmem:[%s3138_s4] sm:$0xff]   ;;  %vm727_vm2 = vcmask 64512  }
  0x42   : > { %2200 = vmatprep.subr.bf16.mxu0 %v2616_v0  ;;  %2202 = vmatprep.mubr.msk.bf16.mxu0 %vm2617_vm0, %v2616_v0  ;;  %v2051_v13 = vld [vmem:[%s3139_s5] ss:$0 sm:$0xff]  ;;  %s2618_s27 = smov 112   ;;  %s2619_s24 = smov 120   ;;  %vm1197_vm3 = vcmask 1043456   ;;  %vm1593_vm4 = vcmask 130048  }
  0x43   : > { %s3177_s29 = smov (!%p521_p10, %s2043_s29), 3  ;;  %2173 = vmatpush3.bf16.msra.mxu1 %v2402_v1  ;;  %v2047_v18 = vld [vmem:[%s3137_s3] ss:$0 sm:$0xff]  ;;  %s2620_s21 = smov 104   ;;  %vm1596_vm5 = vcmask 195584  }
  0x44   : > { %s2044_s22 = sshll.u32 %s3177_s29, 3  ;;  %s2046_s15 = sshll.u32 %s3177_s29, 2  ;;  %2174 = vmatprep.subr.bf16.mxu1 %v2616_v0 }
  0x45   : > { %s524_s20 = scalar_lea.vmem %s3134_s0, %s2044_s22  ;;  %s530_s22 = scalar_lea.vmem %s3135_s1, %s2046_s15 }
  0x46   : > { %v2815_v3 = vld [vmem:[%s524_s20] sm:$0xff]  ;;  %v2817_v4 = vld [vmem:[%s524_s20 + $0x8] sm:$0xff]  ;;  %s2622_s29 = smov 8   ;;  %s2623_s25 = smov 16  }
  0x47   : > { %v538_v5 = vpack.c.bf16 %v2817_v4, %v2815_v3  ;;  %2175 = vmatpush3.bf16.msra.mxu1 %v2403_v2  ;;  %v2406_v8 = vld [vmem:[%s530_s22] sm:$0xff]   ;;  %s2621_s22 = smov 96   ;;  %s2624_s28 = smov 24  }
  0x48   : > { %2180 = vmatprep.subr.bf16.mxu1 %v2616_v0  ;;  %s517_s20 = sand.u32 1, %s2601_s30   ;;  %s2118_s19 = sshll.u32 %s2723_s17, 8 }
  0x49   : > { %s2042_s15 = sshll.u32 %s517_s20, 4  ;;  %s3093_s17 = scalar_lea.sflag [#allocation4], %s517_s20 }
  0x4a   : > { %2177 = vmatmul.mubr.msk.bf16.vlgmr.msra.gmra.mxu1 %vm562_vm1, %v538_v5  ;;  %s2625_s26 = smov [#allocation8]  }
  0x4b   : > { %2181 = vmatpush3.bf16.msra.mxu1 %v2404_v6  ;;  %2184 = vmatprep.mubr.msk.bf16.mxu1 %vm2617_vm0, %v2616_v0  ;;  %s2545_s18 = sshll.u32 %s2625_s26, 4  ;;  %s2546_s18 = int_to_ptr.vmem [resolvable:$false] %s2545_s18 }
  0x4c   : > { %2182 = vmatprep.subr.bf16.mxu1 %v2616_v0 }
  0x4f   : > { %2183 = vmatpush3.bf16.msra.mxu1 %v2405_v7 }
  0x50   : > { %2188 = vmatprep.subr.bf16.mxu1 %v2616_v0 }
  0x52   : > { %2185 = vmatmul.mubr.msk.bf16.vlgmr.msra.gmra.mxu1 %vm562_vm1, %v2406_v8 }
  0x53   : > { %2190 = vmatprep.mubr.msk.bf16.mxu1 %vm2617_vm0, %v2616_v0 }
 0x10a   : > { %v600_v9 = vpop.f32.mrf.mxu1 }
 0x10b   : > { %v601_v23 = vadd.f32 %v2047_v18, %v600_v9 }
 0x10c   : > { %v2178_v10 = vpop.f32.mrf.mxu1 }
 0x10d   : > { %v2114_v27 = vpack.c.bf16 %v601_v23, %v601_v23 }
 0x10e   : > { %v603_v11 = vpop.f32.mrf.mxu1 }
 0x10f   : > { %v604_v24 = vadd.f32 %v2047_v18, %v603_v11 }
 0x110   : > { %v2179_v12 = vpop.f32.mrf.mxu1 }
 0x111   : > { %v607_v28 = vpack.c.bf16 %v604_v24, %v601_v23  ;;  %v2115_v30 = vpack.c.bf16 %v604_v24, %v604_v24 }
 0x112   : > { %v673_v14 = vpop.f32.mrf.mxu1 }
 0x113   : > { %v674_v15 = vadd.f32 %v2051_v13, %v673_v14 }
 0x114   : > { %v2186_v16 = vpop.f32.mrf.mxu1 }
 0x115   : > { %v2116_v17 = vpack.c.bf16 %v674_v15, %v674_v15 }
 0x116   : > { %v676_v19 = vpop.f32.mrf.mxu1 }
 0x117   : > { %v677_v20 = vadd.f32 %v2051_v13, %v676_v19  ;;  %v732_v21 = vsel %vm727_vm2, %v2116_v17, 0 }
 0x118   : > { %v2187_v22 = vpop.f32.mrf.mxu1  ;;  %2189 = vmatpush3.bf16.xpose.msra.mxu1 %v732_v21 }
 0x119   : > { %v680_v25 = vpack.c.bf16 %v677_v20, %v674_v15  ;;  %2194 = vmatprep.subr.bf16.mxu1 %v2616_v0  ;;  %v2848_v26 = vpack.c.bf16 %v677_v20, %v677_v20 }
 0x11b   : > { %707 = vrot.lane.b32.xlu1 %v680_v25, %s2618_s27  ;;  %705 = vrot.lane.b32.xlu0 %v680_v25, %s2619_s24  ;;  %v778_v29 = vsel %vm727_vm2, %v2848_v26, 0 }
 0x11f   : > { %2191 = vmatmul.mubr.msk.bf16.vlgmr.msra.gmra.mxu1 %vm727_vm2, %v2114_v27  ;;  %684 = vrot.lane.b32.xlu1 %v607_v28, %s2618_s27  ;;  %s519_s27 = scalar_lea.vmem [#allocation8], %s2042_s15  ;;  %s2547_s15 = scalar_lea.vmem %s2546_s18, 512 }
 0x120   : > { %682 = vrot.lane.b32.xlu0 %v607_v28, %s2619_s24  ;;  %2195 = vmatpush3.bf16.xpose.msra.mxu1 %v778_v29  ;;  %s1927_s24 = sshll.u32 %s519_s27, 4  ;;  %s3090_s24 = int_to_ptr.vmem [resolvable:$true] %s1927_s24 }
 0x121   : > { %2196 = vmatprep.mubr.msk.bf16.mxu1 %vm2617_vm0, %v2616_v0  ;;  %2206 = vmatprep.subr.bf16.mxu1 %v2616_v0  ;;  %p2548_p8 = scmp.lt.s32.totalorder %s3090_s24, %s2546_s18 }
 0x123   : > { %686 = vrot.lane.b32.xlu1 %v607_v28, %s2620_s21 }
 0x124   : > { %709 = vrot.lane.b32.xlu0 %v680_v25, %s2620_s21 }
 0x127   : > { %2197 = vmatmul.mubr.msk.bf16.vlgmr.msra.gmra.mxu1 %vm727_vm2, %v2115_v30  ;;  %1192 = vrot.lane.b32.xlu1 %v2116_v17, %s2621_s22 }
 0x128   : > { %2208 = vmatprep.mubr.msk.bf16.mxu1 %vm2617_vm0, %v2616_v0 }
 0x18d   : > { %v706_v31 = vpop.permute.xlu0 %705  ;;  %v708_v36 = vpop.permute.xlu1 %707 }
 0x18e   : > { %v2860_v32 = vcombine.low %v706_v31, %v706_v31  ;;  %v2862_v33 = vcombine.high %v706_v31, %v706_v31  ;;  %v2870_v38 = vcombine.low %v708_v36, %v708_v36  ;;  %v2872_v39 = vcombine.high %v708_v36, %v708_v36 }
 0x190   : > { %v824_v34 = vsel %vm727_vm2, %v2860_v32, 0  ;;  %v870_v35 = vsel %vm727_vm2, %v2862_v33, 0  ;;  %v916_v42 = vsel %vm727_vm2, %v2870_v38, 0  ;;  %v962_v43 = vsel %vm727_vm2, %v2872_v39, 0 }
 0x191   : > { %2201 = vmatpush3.bf16.xpose.msra.mxu0 %v824_v34  ;;  %2207 = vmatpush3.bf16.xpose.msra.mxu1 %v870_v35  ;;  %v685_v44 = vpop.permute.xlu1 %684 }
 0x192   : > { %2212 = vmatprep.subr.bf16.mxu0 %v2616_v0  ;;  %2218 = vmatprep.subr.bf16.mxu1 %v2616_v0  ;;  %v683_v37 = vpop.permute.xlu0 %682  ;;  %v2060_v48 = vcombine.low %v685_v44, %v685_v44  ;;  %v2061_v49 = vcombine.high %v685_v44, %v685_v44 }
 0x193   : > { %v2058_v40 = vcombine.low %v683_v37, %v683_v37  ;;  %v2059_v41 = vcombine.high %v683_v37, %v683_v37 }
 0x195   : > { %v687_v50 = vpop.permute.xlu1 %686 }
 0x196   : > { %v710_v45 = vpop.permute.xlu0 %709  ;;  %v2062_v54 = vcombine.low %v687_v50, %v687_v50  ;;  %v2063_v55 = vcombine.high %v687_v50, %v687_v50 }
 0x197   : > { %v2886_v46 = vcombine.low %v710_v45, %v710_v45  ;;  %v2888_v47 = vcombine.high %v710_v45, %v710_v45 }
 0x198   : > { %2203 = vmatmul.mubr.msk.bf16.vlgmr.msra.gmra.mxu0 %vm727_vm2, %v2058_v40  ;;  %2209 = vmatmul.mubr.msk.bf16.vlgmr.msra.gmra.mxu1 %vm727_vm2, %v2059_v41 }
 0x199   : > { %2213 = vmatpush3.bf16.xpose.msra.mxu0 %v916_v42  ;;  %2219 = vmatpush3.bf16.xpose.msra.mxu1 %v962_v43  ;;  %v1008_v51 = vsel %vm727_vm2, %v2886_v46, 0  ;;  %v1054_v52 = vsel %vm727_vm2, %v2888_v47, 0  ;;  %v1193_v53 = vpop.permute.xlu1 %1192 }
 0x19a   : > { %2214 = vmatprep.mubr.msk.bf16.mxu0 %vm2617_vm0, %v2616_v0  ;;  %2220 = vmatprep.mubr.msk.bf16.mxu1 %vm2617_vm0, %v2616_v0  ;;  %v1199_v56 = vsel %vm1197_vm3, %v1193_v53, 0 }
 0x19b   : > { %2224 = vmatprep.subr.bf16.mxu0 %v2616_v0  ;;  %2230 = vmatprep.subr.bf16.mxu1 %v2616_v0 }
 0x1a0   : > { %2215 = vmatmul.mubr.msk.bf16.vlgmr.msra.gmra.mxu0 %vm727_vm2, %v2060_v48  ;;  %2221 = vmatmul.mubr.msk.bf16.vlgmr.msra.gmra.mxu1 %vm727_vm2, %v2061_v49 }
 0x1a1   : > { %2225 = vmatpush3.bf16.xpose.msra.mxu0 %v1008_v51  ;;  %2231 = vmatpush3.bf16.xpose.msra.mxu1 %v1054_v52 }
 0x1a2   : > { %2226 = vmatprep.mubr.msk.bf16.mxu0 %vm2617_vm0, %v2616_v0  ;;  %2232 = vmatprep.mubr.msk.bf16.mxu1 %vm2617_vm0, %v2616_v0 }
 0x1a3   : > { %2236 = vmatprep.subr.bf16.mxu0 %v2616_v0  ;;  %2242 = vmatprep.subr.bf16.mxu1 %v2616_v0 }
 0x1a8   : > { %2227 = vmatmul.mubr.msk.bf16.vlgmr.msra.gmra.mxu0 %vm727_vm2, %v2062_v54  ;;  %2233 = vmatmul.mubr.msk.bf16.vlgmr.msra.gmra.mxu1 %vm727_vm2, %v2063_v55 }
 0x1a9   : > { %2237 = vmatpush3.bf16.msra.mxu0 %v1199_v56  ;;  %2244 = vmatprep.mubr.msk.bf16.mxu1 %vm2617_vm0, %v2616_v0 }
 0x1aa   : > { %2238 = vmatprep.mubr.msk.bf16.mxu0 %vm2617_vm0, %v2616_v0  ;;  %2248 = vmatprep.subr.bf16.mxu0 %v2616_v0 }
 0x1df   : > { %v768_v57 = vpop.f32.mrf.mxu1 }
 0x1e0   : > { %v1096_v58 = vsel %vm727_vm2, %v768_v57, -inf }
 0x1e1   : > { %1097 = vmax.xlane.f32.xlu0 %v1096_v58  ;;  %v2192_v59 = vpop.f32.mrf.mxu1 }
 0x1e3   : > { %v771_v60 = vpop.f32.mrf.mxu1 }
 0x1e5   : > { %v2193_v61 = vpop.f32.mrf.mxu1 }
 0x1e7   : > { %v814_v62 = vpop.f32.mrf.mxu1 }
 0x1e8   : > { %v1099_v63 = vsel %vm727_vm2, %v814_v62, -inf }
 0x1e9   : > { %1100 = vmax.xlane.f32.xlu1 %v1099_v63  ;;  %v2198_v1 = vpop.f32.mrf.mxu1 }
 0x1eb   : > { %v817_v2 = vpop.f32.mrf.mxu1 }
 0x1ed   : > { %v2199_v5 = vpop.f32.mrf.mxu1 }
 0x258   : > { %v860_v6 = vpop.f32.mrf.mxu0  ;;  %v906_v7 = vpop.f32.mrf.mxu1 }
 0x259   : > { %v1102_v8 = vsel %vm727_vm2, %v860_v6, -inf  ;;  %v1105_v13 = vsel %vm727_vm2, %v906_v7, -inf }
 0x25a   : > { %v2204_v9 = vpop.f32.mrf.mxu0  ;;  %1103 = vmax.xlane.f32.xlu0 %v1102_v8  ;;  %v2210_v10 = vpop.f32.mrf.mxu1 }
 0x25c   : > { %v863_v11 = vpop.f32.mrf.mxu0  ;;  %v909_v12 = vpop.f32.mrf.mxu1 }
 0x25e   : > { %v2205_v14 = vpop.f32.mrf.mxu0  ;;  %1106 = vmax.xlane.f32.xlu0 %v1105_v13  ;;  %v2211_v15 = vpop.f32.mrf.mxu1 }
 0x260   : > { %v2914_v16 = vpop.f32.mrf.mxu0  ;;  %v2916_v17 = vpop.f32.mrf.mxu1 }
 0x261   : > { %v1108_v18 = vsel %vm727_vm2, %v2914_v16, -inf  ;;  %v1111_v19 = vsel %vm727_vm2, %v2916_v17, -inf }
 0x262   : > { %v2216_v20 = vpop.f32.mrf.mxu0  ;;  %1109 = vmax.xlane.f32.xlu1 %v1108_v18  ;;  %1112 = vmax.xlane.f32.xlu0 %v1111_v19  ;;  %v2222_v21 = vpop.f32.mrf.mxu1 }
 0x264   : > { %v955_v22 = vpop.f32.mrf.mxu0  ;;  %v1001_v23 = vpop.f32.mrf.mxu1 }
 0x266   : > { %v2217_v24 = vpop.f32.mrf.mxu0  ;;  %v2223_v25 = vpop.f32.mrf.mxu1 }
 0x268   : > { %v1044_v27 = vpop.f32.mrf.mxu0  ;;  %v1090_v28 = vpop.f32.mrf.mxu1 }
 0x269   : > { %v1114_v29 = vsel %vm727_vm2, %v1044_v27, -inf  ;;  %v1117_v30 = vsel %vm727_vm2, %v1090_v28, -inf }
 0x26a   : > { %v2228_v31 = vpop.f32.mrf.mxu0  ;;  %1115 = vmax.xlane.f32.xlu1 %v1114_v29  ;;  %1118 = vmax.xlane.f32.xlu0 %v1117_v30  ;;  %v2234_v34 = vpop.f32.mrf.mxu1 }
 0x26b   : > { %v1098_v43 = vpop.xlane.xlu0 %1097 }
 0x26c   : > { %v1047_v35 = vpop.f32.mrf.mxu0  ;;  %v1093_v36 = vpop.f32.mrf.mxu1  ;;  %v1120_v44 = vsub.f32 %v768_v57, %v1098_v43 }
 0x26e   : > { %v2229_v37 = vpop.f32.mrf.mxu0  ;;  %v2235_v40 = vpop.f32.mrf.mxu1  ;;  %v1128_v48 = vmul.f32 1.442695, %v1120_v44 }
 0x272   : > { %v1101_v41 = vpop.xlane.xlu1 %1100 }
 0x273   : > { %v1121_v42 = vsub.f32 %v814_v62, %v1101_v41 }
 0x275   : > { %v1130_v45 = vmul.f32 1.442695, %v1121_v42 }
 0x277   : > { %2419 = vpow2.f32 %v1130_v45 }
 0x278   : > { %2421 = vpow2.f32 %v1128_v48 }
 0x27b   : > { %1289 = vrot.lane.b32.xlu1 %v2860_v32, %s2621_s22 }
 0x27f   : > { %1337 = vrot.lane.b32.xlu1 %v2862_v33, %s2621_s22 }
 0x280   : > { %1241 = vrot.lane.b32.xlu0 %v2848_v26, %s2621_s22 }
 0x284   : > { %v2420_v49 = vpop.eup %2419 }
 0x285   : > { %v1147_v50 = vsel %vm727_vm2, %v2420_v49, 0.0  ;;  %v2931_v51 = vpop.eup %2421 }
 0x286   : > { %v1144_v32 = vsel %vm727_vm2, %v2931_v51, 0.0 }
 0x29f   : > { %1148 = vadd.xlane.f32.xlu0 %v1147_v50 }
 0x2a3   : > { %1145 = vadd.xlane.f32.xlu1 %v1144_v32 }
 0x2e3   : > { %v1104_v33 = vpop.xlane.xlu0 %1103 }
 0x2e4   : > { %v1122_v26 = vsub.f32 %v860_v6, %v1104_v33 }
 0x2e6   : > { %v1132_v52 = vmul.f32 1.442695, %v1122_v26 }
 0x2e7   : > { %v1107_v53 = vpop.xlane.xlu0 %1106 }
 0x2e8   : > { %2423 = vpow2.f32 %v1132_v52  ;;  %v1123_v54 = vsub.f32 %v906_v7, %v1107_v53 }
 0x2ea   : > { %v1134_v55 = vmul.f32 1.442695, %v1123_v54 }
 0x2eb   : > { %v1113_v56 = vpop.xlane.xlu0 %1112  ;;  %v1110_v1 = vpop.xlane.xlu1 %1109 }
 0x2ec   : > { %2425 = vpow2.f32 %v1134_v55  ;;  %v1124_v2 = vsub.f32 %v2914_v16, %v1110_v1  ;;  %v1125_v6 = vsub.f32 %v2916_v17, %v1113_v56 }
 0x2ee   : > { %v1136_v7 = vmul.f32 1.442695, %v1124_v2  ;;  %v1138_v9 = vmul.f32 1.442695, %v1125_v6 }
 0x2f0   : > { %2427 = vpow2.f32 %v1136_v7 }
 0x2f1   : > { %2429 = vpow2.f32 %v1138_v9 }
 0x2f3   : > { %v1119_v57 = vpop.xlane.xlu0 %1118  ;;  %v1116_v5 = vpop.xlane.xlu1 %1115 }
 0x2f4   : > { %v1126_v8 = vsub.f32 %v1044_v27, %v1116_v5  ;;  %v1127_v11 = vsub.f32 %v1090_v28, %v1119_v57 }
 0x2f5   : > { %v2935_v58 = vpop.eup %2423 }
 0x2f6   : > { %v1150_v59 = vsel %vm727_vm2, %v2935_v58, 0.0  ;;  %v1140_v10 = vmul.f32 1.442695, %v1126_v8  ;;  %v1142_v12 = vmul.f32 1.442695, %v1127_v11 }
 0x2f7   : > { %1151 = vadd.xlane.f32.xlu1 %v1150_v59  ;;  %v1242_v60 = vpop.permute.xlu0 %1241  ;;  %v1290_v13 = vpop.permute.xlu1 %1289 }
 0x2f8   : > { %v1247_v61 = vsel %vm1197_vm3, %v1242_v60, 0  ;;  %2431 = vpow2.f32 %v1140_v10  ;;  %v1295_v31 = vsel %vm1197_vm3, %v1290_v13, 0 }
 0x2f9   : > { %v2940_v62 = vpop.eup %2425  ;;  %2243 = vmatpush3.bf16.msra.mxu1 %v1247_v61  ;;  %2433 = vpow2.f32 %v1142_v12 }
 0x2fa   : > { %v1153_v63 = vsel %vm727_vm2, %v2940_v62, 0.0  ;;  %2254 = vmatprep.subr.bf16.mxu1 %v2616_v0 }
 0x2fb   : > { %1154 = vadd.xlane.f32.xlu0 %v1153_v63  ;;  %v1338_v14 = vpop.permute.xlu1 %1337 }
 0x2fc   : > { %v1343_v28 = vsel %vm1197_vm3, %v1338_v14, 0 }
 0x308   : > { %1433 = vrot.lane.b32.xlu1 %v2872_v39, %s2621_s22  ;;  %v2951_v39 = vpop.eup %2427 }
 0x309   : > { %v2953_v15 = vpop.eup %2429  ;;  %v1156_v16 = vsel %vm727_vm2, %v2951_v39, 0.0 }
 0x30a   : > { %v2957_v17 = vpop.eup %2431  ;;  %v1159_v20 = vsel %vm727_vm2, %v2953_v15, 0.0 }
 0x30b   : > { %v1162_v19 = vsel %vm727_vm2, %v2957_v17, 0.0  ;;  %v2963_v21 = vpop.eup %2433 }
 0x30c   : > { %v1165_v22 = vsel %vm727_vm2, %v2963_v21, 0.0 }
 0x311   : > { %1385 = vrot.lane.b32.xlu0 %v2870_v38, %s2621_s22 }
 0x328   : > { %v1149_v38 = vpop.xlane.xlu0 %1148 }
 0x329   : > { %2435 = vrcp.f32 %v1149_v38 }
 0x32c   : > { %1157 = vadd.xlane.f32.xlu1 %v1156_v16  ;;  %v1146_v18 = vpop.xlane.xlu1 %1145 }
 0x32d   : > { %2437 = vrcp.f32 %v1146_v18 }
 0x330   : > { %1163 = vadd.xlane.f32.xlu1 %v1162_v19  ;;  %1160 = vadd.xlane.f32.xlu0 %v1159_v20  ;;  %v2407_v20 = vld [vmem:[#allocation2 + $0x8] sm:$0xff]  }
 0x334   : > { %1166 = vadd.xlane.f32.xlu0 %v1165_v22 }
 0x336   : > { %v2436_v23 = vpop.eup %2435 }
 0x337   : > { %v1177_v24 = vmul.f32 %v2436_v23, %v2420_v49 }
 0x339   : > { %v1185_v25 = vpack.c.bf16 %v1177_v24, %v1177_v24 }
 0x33a   : > { %v2438_v27 = vpop.eup %2437 }
 0x33b   : > { %2245 = vmatmul.mubr.msk.bf16.vlgmr.msra.gmra.mxu1 %vm727_vm2, %v1185_v25  ;;  %v1176_v29 = vmul.f32 %v2438_v27, %v2931_v51 }
 0x33c   : > { %2255 = vmatpush3.bf16.msra.mxu1 %v1343_v28  ;;  %2256 = vmatprep.mubr.msk.bf16.mxu1 %vm2617_vm0, %v2616_v0 }
 0x33d   : > { %v1184_v30 = vpack.c.bf16 %v1176_v29, %v1176_v29  ;;  %2266 = vmatprep.subr.bf16.mxu1 %v2616_v0 }
 0x33f   : > { %2239 = vmatmul.mubr.msk.bf16.vlgmr.msra.gmra.mxu0 %vm727_vm2, %v1184_v30 }
 0x340   : > { %2249 = vmatpush3.bf16.msra.mxu0 %v1295_v31  ;;  %2250 = vmatprep.mubr.msk.bf16.mxu0 %vm2617_vm0, %v2616_v0 }
 0x341   : > { %1529 = vrot.lane.b32.xlu1 %v2888_v47, %s2621_s22  ;;  %2260 = vmatprep.subr.bf16.mxu0 %v2616_v0 }
 0x34a   : > { %1481 = vrot.lane.b32.xlu0 %v2886_v46, %s2621_s22 }
 0x380   : > { %v1152_v34 = vpop.xlane.xlu1 %1151 }
 0x381   : > { %2439 = vrcp.f32 %v1152_v34 }
 0x384   : > { %v1155_v35 = vpop.xlane.xlu0 %1154  ;;  %v1434_v44 = vpop.permute.xlu1 %1433 }
 0x385   : > { %2441 = vrcp.f32 %v1155_v35  ;;  %v1439_v45 = vsel %vm1197_vm3, %v1434_v44, 0 }
 0x388   : > { %v1386_v40 = vpop.permute.xlu0 %1385 }
 0x389   : > { %v1391_v43 = vsel %vm1197_vm3, %v1386_v40, 0 }
 0x38e   : > { %v2440_v36 = vpop.eup %2439 }
 0x38f   : > { %v1178_v37 = vmul.f32 %v2440_v36, %v2935_v58 }
 0x391   : > { %v1186_v41 = vpack.c.bf16 %v1178_v37, %v1178_v37 }
 0x392   : > { %v2442_v42 = vpop.eup %2441 }
 0x393   : > { %2251 = vmatmul.mubr.msk.bf16.vlgmr.msra.gmra.mxu0 %vm727_vm2, %v1186_v41  ;;  %v1179_v47 = vmul.f32 %v2442_v42, %v2940_v62 }
 0x394   : > { %2261 = vmatpush3.bf16.msra.mxu0 %v1391_v43  ;;  %2262 = vmatprep.mubr.msk.bf16.mxu0 %vm2617_vm0, %v2616_v0 }
 0x395   : > { %v1187_v46 = vpack.c.bf16 %v1179_v47, %v1179_v47  ;;  %2272 = vmatprep.subr.bf16.mxu0 %v2616_v0 }
 0x397   : > { %2257 = vmatmul.mubr.msk.bf16.vlgmr.msra.gmra.mxu1 %vm727_vm2, %v1187_v46 }
 0x398   : > { %2267 = vmatpush3.bf16.msra.mxu1 %v1439_v45  ;;  %2268 = vmatprep.mubr.msk.bf16.mxu1 %vm2617_vm0, %v2616_v0 }
 0x399   : > { %2278 = vmatprep.subr.bf16.mxu1 %v2616_v0 }
 0x3b5   : > { %v1158_v48 = vpop.xlane.xlu1 %1157 }
 0x3b6   : > { %2443 = vrcp.f32 %v1158_v48 }
 0x3b9   : > { %v1164_v49 = vpop.xlane.xlu1 %1163  ;;  %v1161_v50 = vpop.xlane.xlu0 %1160 }
 0x3ba   : > { %2445 = vrcp.f32 %v1164_v49 }
 0x3bb   : > { %2447 = vrcp.f32 %v1161_v50 }
 0x3bd   : > { %v1167_v51 = vpop.xlane.xlu0 %1166  ;;  %v1530_v57 = vpop.permute.xlu1 %1529 }
 0x3be   : > { %2449 = vrcp.f32 %v1167_v51  ;;  %v1535_v61 = vsel %vm1197_vm3, %v1530_v57, 0  ;;  %v2088_v51 = vld [vmem:[%s3141_s7] ss:$0 sm:$0xff] }
 0x3c1   : > { %v1482_v26 = vpop.permute.xlu0 %1481 }
 0x3c2   : > { %v1487_v55 = vsel %vm1197_vm3, %v1482_v26, 0 }
 0x3c3   : > { %v2444_v32 = vpop.eup %2443 }
 0x3c4   : > { %v1180_v33 = vmul.f32 %v2444_v32, %v2951_v39 }
 0x3c6   : > { %v1188_v52 = vpack.c.bf16 %v1180_v33, %v1180_v33 }
 0x3c7   : > { %v2446_v53 = vpop.eup %2445 }
 0x3c8   : > { %v2448_v54 = vpop.eup %2447  ;;  %2263 = vmatmul.mubr.msk.bf16.vlgmr.msra.gmra.mxu0 %vm727_vm2, %v1188_v52  ;;  %v1182_v58 = vmul.f32 %v2446_v53, %v2957_v17 }
 0x3c9   : > { %2273 = vmatpush3.bf16.msra.mxu0 %v1487_v55  ;;  %v1181_v56 = vmul.f32 %v2448_v54, %v2953_v15  ;;  %2274 = vmatprep.mubr.msk.bf16.mxu0 %vm2617_vm0, %v2616_v0 }
 0x3ca   : > { %2284 = vmatprep.subr.bf16.mxu0 %v2616_v0  ;;  %v1190_v62 = vpack.c.bf16 %v1182_v58, %v1182_v58 }
 0x3cb   : > { %v1189_v59 = vpack.c.bf16 %v1181_v56, %v1181_v56  ;;  %v2450_v60 = vpop.eup %2449 }
 0x3cc   : > { %v1183_v63 = vmul.f32 %v2450_v60, %v2963_v21  ;;  %v2408_v21 = vld [vmem:[#allocation2] sm:$0xff]  }
 0x3cd   : > { %2269 = vmatmul.mubr.msk.bf16.vlgmr.msra.gmra.mxu1 %vm727_vm2, %v1189_v59 }
 0x3ce   : > { %2279 = vmatpush3.bf16.msra.mxu1 %v1535_v61  ;;  %2280 = vmatprep.mubr.msk.bf16.mxu1 %vm2617_vm0, %v2616_v0  ;;  %v1191_v1 = vpack.c.bf16 %v1183_v63, %v1183_v63 }
 0x3cf   : > { %2292 = vmatprep.subr.bf16.mxu1 %v2616_v0 }
 0x3d0   : > { %2275 = vmatmul.mubr.msk.bf16.vlgmr.msra.gmra.mxu0 %vm727_vm2, %v1190_v62 }
 0x3d1   : > { %2288 = vmatprep.mubr.msk.bf16.mxu0 %vm2617_vm0, %v2616_v0  ;;  %2285 = vmatpush3.bf16.msra.mxu0 %v2407_v20 }
 0x3d2   : > { %2286 = vmatprep.subr.bf16.mxu0 %v2616_v0 }
 0x3d5   : > { %2281 = vmatmul.mubr.msk.bf16.vlgmr.msra.gmra.mxu1 %vm727_vm2, %v1191_v1  ;;  %2287 = vmatpush3.bf16.msra.mxu0 %v2408_v21 }
 0x3d6   : > { %2296 = vmatprep.mubr.msk.bf16.mxu1 %vm2617_vm0, %v2616_v0  ;;  %2300 = vmatprep.subr.bf16.mxu0 %v2616_v0 }
 0x3fb   : > { %v1283_v2 = vpop.f32.mrf.mxu1 }
 0x3fd   : > { %v2246_v5 = vpop.f32.mrf.mxu1 }
 0x3ff   : > { %v1235_v6 = vpop.f32.mrf.mxu0  ;;  %v1286_v7 = vpop.f32.mrf.mxu1 }
 0x400   : > { %v1577_v8 = vpack.c.bf16 %v1283_v2, %v1235_v6  ;;  %v2409_v6 = vld [vmem:[#allocation5 + $0x8] sm:$0xff]   ;;  %v2410_v7 = vld [vmem:[#allocation5] sm:$0xff]  }
 0x401   : > { %v2240_v9 = vpop.f32.mrf.mxu0  ;;  %v2247_v10 = vpop.f32.mrf.mxu1  ;;  %2293 = vmatpush3.bf16.msra.mxu1 %v2409_v6 }
 0x402   : > { %2294 = vmatprep.subr.bf16.mxu1 %v2616_v0 }
 0x403   : > { %v1238_v11 = vpop.f32.mrf.mxu0 }
 0x405   : > { %v2241_v12 = vpop.f32.mrf.mxu0  ;;  %2295 = vmatpush3.bf16.msra.mxu1 %v2410_v7 }
 0x453   : > { %v1331_v13 = vpop.f32.mrf.mxu0 }
 0x455   : > { %v2252_v39 = vpop.f32.mrf.mxu0 }
 0x457   : > { %v1334_v14 = vpop.f32.mrf.mxu0  ;;  %v1379_v38 = vpop.f32.mrf.mxu1 }
 0x458   : > { %v1578_v15 = vpack.c.bf16 %v1379_v38, %v1331_v13  ;;  %v2092_v38 = vld [vmem:[%s3142_s8] ss:$0 sm:$0xff] }
 0x459   : > { %v2253_v16 = vpop.f32.mrf.mxu0  ;;  %v2258_v17 = vpop.f32.mrf.mxu1 }
 0x45a   : > { %1582 = vrot.lane.b32.xlu0 %v1578_v15, %s2622_s29 }
 0x45b   : > { %v1382_v18 = vpop.f32.mrf.mxu1 }
 0x45c   : > { %v2093_v18 = vld [vmem:[%s3143_s9] ss:$0 sm:$0xff] }
 0x45d   : > { %v2259_v19 = vpop.f32.mrf.mxu1 }
 0x488   : > { %v1427_v22 = vpop.f32.mrf.mxu0 }
 0x48a   : > { %v2264_v23 = vpop.f32.mrf.mxu0 }
 0x48b   : > { %v2411_v23 = vld [vmem:[%s3146_s12 + $0x38] sm:$0xff]  }
 0x48c   : > { %v1430_v24 = vpop.f32.mrf.mxu0 }
 0x48d   : > { %v1475_v25 = vpop.f32.mrf.mxu1  ;;  %v2412_v24 = vld [vmem:[%s3146_s12 + $0x30] sm:$0xff]  }
 0x48e   : > { %v1579_v27 = vpack.c.bf16 %v1475_v25, %v1427_v22  ;;  %v2265_v28 = vpop.f32.mrf.mxu0  ;;  %v2413_v25 = vld [vmem:[%s3146_s12 + $0x28] sm:$0xff]  }
 0x48f   : > { %v2270_v29 = vpop.f32.mrf.mxu1  ;;  %v2415_v28 = vld [vmem:[%s3146_s12 + $0x18] sm:$0xff]  }
 0x490   : > { %1585 = vrot.lane.b32.xlu1 %v1579_v27, %s2623_s25  ;;  %v1523_v30 = vpop.f32.mrf.mxu0  ;;  %v2414_v27 = vld [vmem:[%s3146_s12 + $0x20] sm:$0xff]   ;;  %v2416_v29 = vld [vmem:[%s3146_s12 + $0x10] sm:$0xff]   ;;  %s3087_s25 = scalar_lea.hbm %s3148_s14, %s2118_s19 }
 0x491   : > { %v1478_v31 = vpop.f32.mrf.mxu1 }
 0x492   : > { %v2276_v34 = vpop.f32.mrf.mxu0  ;;  %v2418_v31 = vld [vmem:[%s3146_s12] sm:$0xff]  }
 0x493   : > { %v2271_v35 = vpop.f32.mrf.mxu1  ;;  %v2094_v34 = vld [vmem:[#allocation7] ss:$0 sm:$0xff] }
 0x494   : > { %v1526_v36 = vpop.f32.mrf.mxu0 }
 0x495   : > { %v1571_v37 = vpop.f32.mrf.mxu1 }
 0x496   : > { %v1580_v40 = vpack.c.bf16 %v1571_v37, %v1523_v30  ;;  %v2277_v41 = vpop.f32.mrf.mxu0  ;;  %v2417_v30 = vld [vmem:[%s3146_s12 + $0x8] sm:$0xff]  }
 0x497   : > { %v2282_v42 = vpop.f32.mrf.mxu1 }
 0x498   : > { %1588 = vrot.lane.b32.xlu0 %v1580_v40, %s2624_s28  ;;  %s2541_s28 = scalar_lea.vmem %s3090_s24, 256 }
 0x499   : > { %v1574_v43 = vpop.f32.mrf.mxu1  ;;  %p2542_p12 = scmp.ne.s32.totalorder %s3090_s24, %s2541_s28  ;;  %p2549_p11 = scmp.lt.s32.totalorder %s2547_s15, %s2541_s28 }
 0x49b   : > { %v2283_v47 = vpop.f32.mrf.mxu1  ;;  %p2543_p4 = pnand %p2542_p12, %p2740_p5  ;;  %p2550_p0 = por %p2549_p11, %p2548_p8 }
 0x49d   : > { %p2544_p7 = pneg %p2543_p4 }
 0x49f   : > { %p2551_p6 = pnand %p2550_p0, %p2544_p7 }
 0x4cc   : > { %v1583_v44 = vpop.permute.xlu0 %1582 }
 0x4cd   : > { %v1592_v45 = vsel %vm727_vm2, %v1577_v8, %v1583_v44 }
 0x502   : > { %v1586_v46 = vpop.permute.xlu1 %1585 }
 0x503   : > { %v1595_v48 = vsel %vm1593_vm4, %v1592_v45, %v1586_v46 }
 0x50a   : > { %v1589_v49 = vpop.permute.xlu0 %1588 }
 0x50b   : > { %v1598_v50 = vsel %vm1596_vm5, %v1595_v48, %v1589_v49 }
 0x50c   : > { %2289 = vmatmul.mubr.msk.bf16.vlgmr.msra.gmra.mxu0 %vm562_vm1, %v1598_v50 }
 0x50d   : > { %2316 = vmatprep.mubr.msk.bf16.mxu0 %vm2617_vm0, %v2616_v0  ;;  %2301 = vmatpush3.bf16.msra.mxu0 %v2411_v23 }
 0x50e   : > { %2302 = vmatprep.subr.bf16.mxu0 %v2616_v0 }
 0x511   : > { %2303 = vmatpush3.bf16.msra.mxu0 %v2412_v24 }
 0x512   : > { %2304 = vmatprep.subr.bf16.mxu0 %v2616_v0 }
 0x515   : > { %2305 = vmatpush3.bf16.msra.mxu0 %v2413_v25 }
 0x516   : > { %2306 = vmatprep.subr.bf16.mxu0 %v2616_v0 }
 0x519   : > { %2307 = vmatpush3.bf16.msra.mxu0 %v2414_v27 }
 0x51a   : > { %2308 = vmatprep.subr.bf16.mxu0 %v2616_v0 }
 0x51d   : > { %2309 = vmatpush3.bf16.msra.mxu0 %v2415_v28 }
 0x51e   : > { %2310 = vmatprep.subr.bf16.mxu0 %v2616_v0 }
 0x521   : > { %2311 = vmatpush3.bf16.msra.mxu0 %v2416_v29 }
 0x522   : > { %2312 = vmatprep.subr.bf16.mxu0 %v2616_v0 }
 0x525   : > { %2313 = vmatpush3.bf16.msra.mxu0 %v2417_v30 }
 0x526   : > { %2314 = vmatprep.subr.bf16.mxu0 %v2616_v0 }
 0x529   : > { %2315 = vmatpush3.bf16.msra.mxu0 %v2418_v31 }
 0x5cc   : > { %v1658_v32 = vpop.f32.mrf.mxu0 }
 0x5cd   : > { %v1659_v33 = vadd.f32 %v2088_v51, %v1658_v32 }
 0x5ce   : > { %v2290_v26 = vpop.f32.mrf.mxu0 }
 0x5cf   : > { %v3025_v52 = vadd.f32 %v1659_v33, %v2815_v3 }
 0x5d0   : > { %v1661_v53 = vpop.f32.mrf.mxu0 }
 0x5d1   : > { %v1662_v54 = vadd.f32 %v2088_v51, %v1661_v53  ;;  %v1669_v55 = vsel %vm562_vm1, %v3025_v52, 0.0  ;;  %v2100_v53 = vld [vmem:[%s3147_s13] ss:$0 sm:$0xff] }
 0x5d2   : > { %1670 = vadd.xlane.f32.xlu1 %v1669_v55  ;;  %v2291_v56 = vpop.f32.mrf.mxu0 }
 0x5d3   : > { %v3030_v57 = vadd.f32 %v1662_v54, %v2817_v4 }
 0x5d5   : > { %v1672_v58 = vsel %vm562_vm1, %v3030_v57, 0.0 }
 0x5d6   : > { %1673 = vadd.xlane.f32.xlu0 %v1672_v58 }
 0x65b   : > { %v1671_v59 = vpop.xlane.xlu1 %1670 }
 0x65c   : > { %v1676_v60 = vmul.f32 0.03125, %v1671_v59 }
 0x65e   : > { %v1678_v61 = vsub.f32 %v3025_v52, %v1676_v60 }
 0x65f   : > { %v1674_v3 = vpop.xlane.xlu0 %1673 }
 0x660   : > { %v1677_v62 = vmul.f32 0.03125, %v1674_v3  ;;  %v1680_v63 = vmul.f32 %v1678_v61, %v1678_v61 }
 0x662   : > { %v1679_v1 = vsub.f32 %v3030_v57, %v1677_v62  ;;  %v1682_v2 = vsel %vm562_vm1, %v1680_v63, 0.0 }
 0x663   : > { %1683 = vadd.xlane.f32.xlu0 %v1682_v2 }
 0x664   : > { %v1681_v5 = vmul.f32 %v1679_v1, %v1679_v1 }
 0x666   : > { %v1685_v4 = vsel %vm562_vm1, %v1681_v5, 0.0 }
 0x667   : > { %1686 = vadd.xlane.f32.xlu1 %v1685_v4 }
 0x6ec   : > { %v1684_v8 = vpop.xlane.xlu0 %1683 }
 0x6ed   : > { %v1688_v9 = vmul.f32 0.03125, %v1684_v8 }
 0x6ef   : > { %v1690_v10 = vadd.f32 1e-05, %v1688_v9 }
 0x6f0   : > { %v1687_v11 = vpop.xlane.xlu1 %1686 }
 0x6f1   : > { %2451 = vrsqrt.f32 %v1690_v10  ;;  %v1689_v12 = vmul.f32 0.03125, %v1687_v11 }
 0x6f3   : > { %v1691_v13 = vadd.f32 1e-05, %v1689_v12 }
 0x6f5   : > { %2453 = vrsqrt.f32 %v1691_v13 }
 0x6fe   : > { %v2452_v39 = vpop.eup %2451 }
 0x6ff   : > { %v1694_v14 = vmul.f32 %v2452_v39, %v1678_v61 }
 0x701   : > { %v1702_v17 = vmul.f32 %v2092_v38, %v1694_v14 }
 0x702   : > { %v2454_v15 = vpop.eup %2453 }
 0x703   : > { %v1695_v16 = vmul.f32 %v2454_v15, %v1679_v1  ;;  %v1710_v20 = vadd.f32 %v2093_v18, %v1702_v17 }
 0x705   : > { %v1703_v19 = vmul.f32 %v2092_v38, %v1695_v16 }
 0x707   : > { %v1711_v21 = vadd.f32 %v2093_v18, %v1703_v19 }
 0x709   : > { %v1712_v22 = vpack.c.bf16 %v1711_v21, %v1710_v20 }
 0x70b   : > { %2297 = vmatmul.mubr.msk.bf16.vlgmr.msra.gmra.mxu1 %vm562_vm1, %v1712_v22 }
 0x7cb   : > { %v1773_v35 = vpop.f32.mrf.mxu1 }
 0x7cc   : > { %v1774_v36 = vadd.f32 %v2094_v34, %v1773_v35 }
 0x7cd   : > { %v2298_v37 = vpop.f32.mrf.mxu1 }
 0x7ce   : > { %v2098_v40 = vmul.f32 -1.702, %v1774_v36 }
 0x7cf   : > { %v1776_v41 = vpop.f32.mrf.mxu1 }
 0x7d0   : > { %v1784_v42 = vmul.f32 1.442695, %v2098_v40  ;;  %v1777_v43 = vadd.f32 %v2094_v34, %v1776_v41 }
 0x7d1   : > { %v2299_v47 = vpop.f32.mrf.mxu1 }
 0x7d2   : > { %2455 = vpow2.f32 %v1784_v42  ;;  %v2099_v44 = vmul.f32 -1.702, %v1777_v43 }
 0x7d4   : > { %v1786_v46 = vmul.f32 1.442695, %v2099_v44 }
 0x7d6   : > { %2457 = vpow2.f32 %v1786_v46 }
 0x7df   : > { %v2456_v0 = vpop.eup %2455 }
 0x7e0   : > { %v1788_v45 = vadd.f32 1.0, %v2456_v0 }
 0x7e2   : > { %2459 = vrcp.f32 %v1788_v45 }
 0x7e3   : > { %v2458_v48 = vpop.eup %2457 }
 0x7e4   : > { %v1789_v49 = vadd.f32 1.0, %v2458_v48 }
 0x7e6   : > { %2461 = vrcp.f32 %v1789_v49 }
 0x7ef   : > { %v2460_v50 = vpop.eup %2459 }
 0x7f0   : > { %v1794_v32 = vmul.f32 %v2460_v50, %v1774_v36 }
 0x7f3   : > { %v2462_v51 = vpop.eup %2461 }
 0x7f4   : > { %v1795_v33 = vmul.f32 %v2462_v51, %v1777_v43 }
 0x7f6   : > { %v1796_v26 = vpack.c.bf16 %v1795_v33, %v1794_v32 }
 0x7f8   : > { %2317 = vmatmul.mubr.bf16.vlgmr.msra.gmra.mxu0 %v1796_v26 }
 0x8b8   : > { %v1902_v54 = vpop.f32.mrf.mxu0 }
 0x8b9   : > { %v1903_v55 = vadd.f32 %v2100_v53, %v1902_v54 }
 0x8ba   : > { %v2318_v56 = vpop.f32.mrf.mxu0 }
 0x8bb   : > { %v1909_v58 = vadd.f32 %v1903_v55, %v3025_v52 }
 0x8bc   : > { %v1905_v59 = vpop.f32.mrf.mxu0 }
 0x8bd   : > { %1911 = vst.msk [vmem:[%s519_s27] sm:$0xff] %vm562_vm1, %v1909_v58  ;;  %v1906_v60 = vadd.f32 %v2100_v53, %v1905_v59 }
 0x8be   : > { %v2319_v61 = vpop.f32.mrf.mxu0 }
 0x8bf   : > { %v1910_v3 = vadd.f32 %v1906_v60, %v3030_v57 }
 0x8c1   : > { %1912 = vst.msk [vmem:[%s519_s27 + $0x8] sm:$0xff] %vm562_vm1, %v1910_v3 }
 0x8c2   : > { %2554 = shalt.err (!%p2551_p6)
}
 0x8c3   : > { %s2555_s20 = scalar_lea.hbm %s3087_s25, 256  ;;  %s2559_s21 = scalar_lea.hbm %s3148_s14, 512 }
 0x8c4   : > { %p2556_p9 = scmp.ne.s32.totalorder %s3087_s25, %s2555_s20  ;;  %p2560_p3 = scmp.lt.s32.totalorder %s3087_s25, %s3148_s14 }
 0x8c5   : > { %p2561_p2 = scmp.lt.s32.totalorder %s2559_s21, %s2555_s20 }
 0x8c6   : > { %p2557_p1 = pnand %p2556_p9, %p2740_p5 }
 0x8c7   : > { %p2562_p10 = por %p2561_p2, %p2560_p3 }
 0x8c8   : > { %p2558_p13 = pneg %p2557_p1 }
 0x8ca   : > { %p2563_p12 = pnand %p2562_p10, %p2558_p13 }
 0x8cc   : > { %2566 = shalt.err (!%p2563_p12)
}
 0x8cd   : > { %s2626_s28 = smov 128  }
 0x8ce   : > { %2332 = dma.vmem_to_hbm [thread:$0]  (%p2740_p5), %s3090_s24, 256, %s3087_s25, %s3093_s17, %s2626_s28, %s2626_s28, %s2622_s29  }
 0x8cf PF: > { %s3168_s18 = sld [smem:[#allocation12_spill]]  ;;  %p2354_p4 = scmp.ge.s32.totalorder %s2609_s16, 2 }
 0x8d0   : > { %s3169_s15 = sld [smem:[#allocation16_spill]] }
 0x8d5   : > { %s1942_s19 = sand.u32 1, %s3168_s18  }
 0x8d6   : > { %p3170_p7 = scmp.ne.s32.totalorder %s3169_s15, 0  ;;  %s1943_s20 = scalar_lea.sflag [#allocation4], %s1942_s19 }
 0x8d8   : > { %p2345_p8 = pnand %p2354_p4, %p3170_p7 }
 0x8da   : > { %p2346_p11 = pneg %p2345_p8 }
 0x8dc   : > { %2592 = dma.done.wait (%p2346_p11), %s1943_s20, 256  }
 0x8dd   : > { %2594 = vsyncadd (%p2346_p11), %s1943_s20, 4294967040  ;;  %s3171_s16 = sld [smem:[#allocation14_spill]]  ;;  %s3174_s29 = smov %s2601_s30 }
 0x8de   : > { %s3172_s23 = sld [smem:[#allocation13_spill]] }
 0x8df   : > { %s3173_s15 = sld [smem:[#allocation15_spill]] }
 0x8e3   : > { %p26_p0 = scmp.ge.s32.totalorder %s3171_s16, 4  }
 0x8e4   : > { %s3175_s30 = smov %s3172_s23 }
 0x8e5   :  { %28 = sbr.rel (!%p26_p0) target bundleno = 5 (0x5), region = 127 }
 0x8ea   :  { %1948 = vsyncpa [#allocation3], 1 }
 0x8eb   :  { %1950 = vsyncpa [#allocation3 + $0x1], 1 }
 0x8ec   :  { %1951 = vsyncpa [#allocation6], 1 }
 0x8ed   :  { %1952 = vsyncpa [#allocation4], 1 }
 0x8ee   :  { %1954 = vsyncpa [#allocation4 + $0x1], 1 }

// kernel: tpu_custom_call.1
= control target key start
LH: loop header
LB: loop body
LE: loop exit
PB: predicated region body
PF: predicated region fallthrough
CT: control target
= control target key end

     0   :  { %19 = vsyncpa [#allocation3], 0  ;;  %s3134_s0 = inlined_call_operand.vmem [shape: f32[4,8,32], index: 0, kind: input, shape index: {}]   ;;  %s3135_s1 = inlined_call_operand.vmem [shape: bf16[4,8,32], index: 1, kind: input, shape index: {}]   ;;  %s3136_s2 = inlined_call_operand.vmem [shape: bf16[32,32], index: 2, kind: input, shape index: {}]   ;;  %s3137_s3 = inlined_call_operand.vmem [shape: f32[1,32], index: 3, kind: input, shape index: {}]   ;;  %s3138_s4 = inlined_call_operand.vmem [shape: bf16[32,64], index: 4, kind: input, shape index: {}]   ;;  %s3139_s5 = inlined_call_operand.vmem [shape: f32[1,64], index: 5, kind: input, shape index: {}]   ;;  %s3140_s6 = inlined_call_operand.hbm [shape: bf16[32,32], index: 6, kind: input, shape index: {}]   ;;  %s3141_s7 = inlined_call_operand.vmem [shape: f32[1,32], index: 7, kind: input, shape index: {}]   ;;  %s3142_s8 = inlined_call_operand.vmem [shape: f32[1,32], index: 8, kind: input, shape index: {}]   ;;  %s3143_s9 = inlined_call_operand.vmem [shape: f32[1,32], index: 9, kind: input, shape index: {}]   ;;  %s3144_s10 = inlined_call_operand.hbm [shape: bf16[32,128], index: 10, kind: input, shape index: {}]   ;;  %s3145_s11 = inlined_call_operand.hbm [shape: f32[1,128], index: 11, kind: input, shape index: {}]   ;;  %s3146_s12 = inlined_call_operand.vmem [shape: bf16[128,32], index: 12, kind: input, shape index: {}]   ;;  %s3147_s13 = inlined_call_operand.vmem [shape: f32[1,32], index: 13, kind: input, shape index: {}]   ;;  %s3148_s14 = inlined_call_operand.hbm [shape: f32[4,8,32], index: 14, kind: output, shape index: {}]  }
   0x1   :  { %20 = vsyncpa [#allocation6], 0 }
   0x2   :  { %21 = vsyncpa [#allocation4], 0 }
   0x3   :  { %23 = vsyncpa [#allocation4 + $0x1], 0  ;;  %s2702_s29 = smov 0   ;;  %s2704_s30 = smov 0  }
   0x4   :  { %s2706_s15 = smov 0   ;;  %s2708_s16 = smov 0  }
   0x5 LB: > { %3155 = sst [smem:[#allocation12_spill]] %s2597_s29  ;;  %s2723_s17 = sadd.s32 4294967295, %s2609_s16   ;;  %s2609_s16 = sphi %s2708_s16, %s3171_s16   ;;  %s2605_s15 = sphi %s2706_s15, %s3173_s15   ;;  %s2601_s30 = sphi %s2704_s30, %s3175_s30   ;;  %s2597_s29 = sphi %s2702_s29, %s3174_s29  }
   0x6   : > { %3156 = sst [smem:[#allocation13_spill]] %s2605_s15  ;;  %s2032_s18 = sadd.s32 4294967294, %s2609_s16  }
   0x7   : > { %s2727_s19 = sadd.s32 1, %s2609_s16   ;;  %s340_s20 = sadd.s32 1, %s2605_s15 }
   0x8   : > { %3157 = sst [smem:[#allocation14_spill]] %s2727_s19  ;;  %s337_s21 = ssub.s32 %s2609_s16, %s2727_s19 }
   0x9   : > { %p350_p0 = scmp.ne.s32.totalorder %s2605_s15, %s2601_s30  ;;  %p338_p1 = scmp.eq.s32.totalorder %s337_s21, 0 }
   0xa   : > { %p351_p2 = scmp.eq.s32.totalorder %s2723_s17, 1  ;;  %p356_p3 = scmp.ne.s32.totalorder %s2601_s30, %s2597_s29 }
   0xb   : > { %p357_p4 = scmp.eq.s32.totalorder %s2032_s18, 1  ;;  %p2033_p7 = scmp.ge.s32.totalorder %s2609_s16, 1 }
   0xc   : > { %s2738_s22 = scalar_select %p338_p1, %s2605_s15, %s340_s20  }
   0xd   : > { %p2740_p5 = por %p351_p2, %p350_p0  ;;  %p2744_p6 = por %p357_p4, %p356_p3 }
   0xe   : > { %3158 = sst [smem:[#allocation15_spill]] %s2738_s22  ;;  %p364_p8 = scmp.lt.s32.totalorder %s2609_s16, 3 }
   0xf   : > { %s3160_s24 = scalar_select %p2744_p6, 1, 0 }
  0x10   : > { %p3153_p9 = scmp.eq.s32.totalorder %s2723_s17, 0  ;;  %p2751_p10 = pnand %p2033_p7, %p364_p8 }
  0x11   : > { %3161 = sst [smem:[#allocation16_spill]] %s3160_s24  ;;  %s2611_s26 = smov [#allocation5]  }
  0x12   : > { %p2334_p11 = pneg %p2751_p10  ;;  %s410_s27 = sshll.u32 %s2611_s26, 4  ;;  %s411_s27 = int_to_ptr.vmem [resolvable:$true] %s410_s27 }
  0x13   : > { %s2612_s18 = smov [#allocation2]   ;;  %s2613_s21 = smov [#allocation7]  }
  0x14   : > { %p2759_p12 = pnand %p3153_p9, %p2334_p11  ;;  %s388_s20 = sshll.u32 %s2612_s18, 4  ;;  %s389_s20 = int_to_ptr.vmem [resolvable:$true] %s388_s20 }
  0x15   : > { %s424_s22 = sshll.u32 %s2613_s21, 4  ;;  %s2474_s15 = scalar_lea.vmem %s411_s27, 256  ;;  %s425_s22 = int_to_ptr.vmem [resolvable:$true] %s424_s22 }
  0x16   : > { %p2465_p13 = pneg %p2759_p12  ;;  %p2475_p0 = scmp.ne.s32.totalorder %s411_s27, %s2474_s15 }
  0x17   : > { %p2482_p3 = scmp.lt.s32.totalorder %s411_s27, %s411_s27  ;;  %p2483_p4 = scmp.lt.s32.totalorder %s2474_s15, %s2474_s15 }
  0x18   : > { %p2477_p1 = pnand %p2475_p0, %p2465_p13 }
  0x19   : > { %p2484_p7 = por %p2483_p4, %p2482_p3 }
  0x1a   : > { %p2478_p2 = pneg %p2477_p1 }
  0x1c   : > { %p2485_p8 = pnand %p2484_p7, %p2478_p2 }
  0x1e   : > { %2488 = shalt.err (!%p2485_p8)
}
  0x1f   : > { %s2614_s26 = smov 64   ;;  %s2615_s18 = smov 4  }
  0x20   : > { %2340 = dma.hbm_to_vmem [thread:$0]  (!%p2759_p12), %s3144_s10, 256, %s411_s27, [#allocation6], %s2614_s26, %s2614_s26, %s2615_s18  }
  0x21   : > { %s2500_s24 = scalar_lea.vmem %s389_s20, 256  ;;  %p2508_p9 = scmp.lt.s32.totalorder %s389_s20, %s389_s20 }
  0x22   : > { %p2501_p11 = scmp.ne.s32.totalorder %s389_s20, %s2500_s24  ;;  %p2509_p6 = scmp.lt.s32.totalorder %s2500_s24, %s2500_s24 }
  0x24   : > { %p2503_p0 = pnand %p2501_p11, %p2465_p13  ;;  %p2510_p3 = por %p2509_p6, %p2508_p9 }
  0x26   : > { %p2504_p1 = pneg %p2503_p0 }
  0x28   : > { %p2511_p2 = pnand %p2510_p3, %p2504_p1 }
  0x2a   : > { %2514 = shalt.err (!%p2511_p2)
}
  0x2b   : > { %2337 = dma.hbm_to_vmem [thread:$0]  (!%p2759_p12), %s3140_s6, 256, %s389_s20, [#allocation3], %s2614_s26, %s2614_s26, %s2615_s18  }
  0x2c   : > { %s2526_s19 = scalar_lea.vmem %s425_s22, 16  ;;  %s2533_s27 = scalar_lea.vmem %s425_s22, 32 }
  0x2d   : > { %p2527_p4 = scmp.ne.s32.totalorder %s425_s22, %s2526_s19  ;;  %p2534_p11 = scmp.lt.s32.totalorder %s425_s22, %s425_s22 }
  0x2e   : > { %p2535_p0 = scmp.lt.s32.totalorder %s2533_s27, %s2526_s19 }
  0x2f   : > { %p2529_p7 = pnand %p2527_p4, %p2465_p13 }
  0x30   : > { %p2536_p6 = por %p2535_p0, %p2534_p11 }
  0x31   : > { %p2530_p8 = pneg %p2529_p7 }
  0x33   : > { %p2537_p9 = pnand %p2536_p6, %p2530_p8 }
  0x35   : > { %2540 = shalt.err (!%p2537_p9)
}
  0x36   : > { %2343 = dma.hbm_to_vmem [thread:$0]  (!%p2759_p12), %s3145_s11, 16, %s425_s22, [#allocation6]  }
  0x37   : > { %461 = sbr.rel (%p2751_p10) target bundleno = 2255 (0x8cf), region = 76  ;;  %p3164_p1 = scmp.eq.s32.totalorder (!%p2751_p10), %s2723_s17, 0 }
  0x3c   : > { %2584 = dma.done.wait (%p3164_p1), [#allocation3], 256   ;;  %p3165_p13 = pmov %p3164_p1 }
  0x3d   : > { %p3166_p3 = pmov %p3164_p1 }
  0x3e   : > { %2586 = vsyncadd (%p3165_p13), [#allocation3], 4294967040 }
  0x3f   : > { %2588 = dma.done.wait (%p3166_p3), [#allocation6], 272   ;;  %p3167_p2 = pmov %p3164_p1 }
  0x40   : > { %s2043_s29 = sshll.u32 %s2723_s17, 1  ;;  %v2616_v0 = vmov 0.0   ;;  %vm2617_vm0 = vmmov 0   ;;  %v2402_v1 = vld [vmem:[%s3136_s2 + $0x8] sm:$0xff]   ;;  %v2403_v2 = vld [vmem:[%s3136_s2] sm:$0xff]   ;;  %vm562_vm1 = vcmask 261120  }
  0x41   : > { %2590 = vsyncadd (%p3167_p2), [#allocation6], 4294967024  ;;  %2172 = vmatprep.subr.bf16.mxu1 %v2616_v0  ;;  %2176 = vmatprep.mubr.msk.bf16.mxu1 %vm2617_vm0, %v2616_v0  ;;  %p521_p10 = scmp.lt.s32.totalorder %s2043_s29, 3  ;;  %v2404_v6 = vld [vmem:[%s3138_s4 + $0x8] sm:$0xff]   ;;  %v2405_v7 = vld [vmem:[%s3138_s4] sm:$0xff]   ;;  %vm727_vm2 = vcmask 64512  }
  0x42   : > { %2200 = vmatprep.subr.bf16.mxu0 %v2616_v0  ;;  %2202 = vmatprep.mubr.msk.bf16.mxu0 %vm2617_vm0, %v2616_v0  ;;  %v2051_v13 = vld [vmem:[%s3139_s5] ss:$0 sm:$0xff]  ;;  %s2618_s27 = smov 112   ;;  %s2619_s24 = smov 120   ;;  %vm1197_vm3 = vcmask 1043456   ;;  %vm1593_vm4 = vcmask 130048  }
  0x43   : > { %s3177_s29 = smov (!%p521_p10, %s2043_s29), 3  ;;  %2173 = vmatpush3.bf16.msra.mxu1 %v2402_v1  ;;  %v2047_v18 = vld [vmem:[%s3137_s3] ss:$0 sm:$0xff]  ;;  %s2620_s21 = smov 104   ;;  %vm1596_vm5 = vcmask 195584  }
  0x44   : > { %s2044_s22 = sshll.u32 %s3177_s29, 3  ;;  %s2046_s15 = sshll.u32 %s3177_s29, 2  ;;  %2174 = vmatprep.subr.bf16.mxu1 %v2616_v0 }
  0x45   : > { %s524_s20 = scalar_lea.vmem %s3134_s0, %s2044_s22  ;;  %s530_s22 = scalar_lea.vmem %s3135_s1, %s2046_s15 }
  0x46   : > { %v2815_v3 = vld [vmem:[%s524_s20] sm:$0xff]  ;;  %v2817_v4 = vld [vmem:[%s524_s20 + $0x8] sm:$0xff]  ;;  %s2622_s29 = smov 8   ;;  %s2623_s25 = smov 16  }
  0x47   : > { %v538_v5 = vpack.c.bf16 %v2817_v4, %v2815_v3  ;;  %2175 = vmatpush3.bf16.msra.mxu1 %v2403_v2  ;;  %v2406_v8 = vld [vmem:[%s530_s22] sm:$0xff]   ;;  %s2621_s22 = smov 96   ;;  %s2624_s28 = smov 24  }
  0x48   : > { %2180 = vmatprep.subr.bf16.mxu1 %v2616_v0  ;;  %s517_s20 = sand.u32 1, %s2601_s30   ;;  %s2118_s19 = sshll.u32 %s2723_s17, 8 }
  0x49   : > { %s2042_s15 = sshll.u32 %s517_s20, 4  ;;  %s3093_s17 = scalar_lea.sflag [#allocation4], %s517_s20 }
  0x4a   : > { %2177 = vmatmul.mubr.msk.bf16.vlgmr.msra.gmra.mxu1 %vm562_vm1, %v538_v5  ;;  %s2625_s26 = smov [#allocation8]  }
  0x4b   : > { %2181 = vmatpush3.bf16.msra.mxu1 %v2404_v6  ;;  %2184 = vmatprep.mubr.msk.bf16.mxu1 %vm2617_vm0, %v2616_v0  ;;  %s2545_s18 = sshll.u32 %s2625_s26, 4  ;;  %s2546_s18 = int_to_ptr.vmem [resolvable:$false] %s2545_s18 }
  0x4c   : > { %2182 = vmatprep.subr.bf16.mxu1 %v2616_v0 }
  0x4f   : > { %2183 = vmatpush3.bf16.msra.mxu1 %v2405_v7 }
  0x50   : > { %2188 = vmatprep.subr.bf16.mxu1 %v2616_v0 }
  0x52   : > { %2185 = vmatmul.mubr.msk.bf16.vlgmr.msra.gmra.mxu1 %vm562_vm1, %v2406_v8 }
  0x53   : > { %2190 = vmatprep.mubr.msk.bf16.mxu1 %vm2617_vm0, %v2616_v0 }
 0x10a   : > { %v600_v9 = vpop.f32.mrf.mxu1 }
 0x10b   : > { %v601_v23 = vadd.f32 %v2047_v18, %v600_v9 }
 0x10c   : > { %v2178_v10 = vpop.f32.mrf.mxu1 }
 0x10d   : > { %v2114_v27 = vpack.c.bf16 %v601_v23, %v601_v23 }
 0x10e   : > { %v603_v11 = vpop.f32.mrf.mxu1 }
 0x10f   : > { %v604_v24 = vadd.f32 %v2047_v18, %v603_v11 }
 0x110   : > { %v2179_v12 = vpop.f32.mrf.mxu1 }
 0x111   : > { %v607_v28 = vpack.c.bf16 %v604_v24, %v601_v23  ;;  %v2115_v30 = vpack.c.bf16 %v604_v24, %v604_v24 }
 0x112   : > { %v673_v14 = vpop.f32.mrf.mxu1 }
 0x113   : > { %v674_v15 = vadd.f32 %v2051_v13, %v673_v14 }
 0x114   : > { %v2186_v16 = vpop.f32.mrf.mxu1 }
 0x115   : > { %v2116_v17 = vpack.c.bf16 %v674_v15, %v674_v15 }
 0x116   : > { %v676_v19 = vpop.f32.mrf.mxu1 }
 0x117   : > { %v677_v20 = vadd.f32 %v2051_v13, %v676_v19  ;;  %v732_v21 = vsel %vm727_vm2, %v2116_v17, 0 }
 0x118   : > { %v2187_v22 = vpop.f32.mrf.mxu1  ;;  %2189 = vmatpush3.bf16.xpose.msra.mxu1 %v732_v21 }
 0x119   : > { %v680_v25 = vpack.c.bf16 %v677_v20, %v674_v15  ;;  %2194 = vmatprep.subr.bf16.mxu1 %v2616_v0  ;;  %v2848_v26 = vpack.c.bf16 %v677_v20, %v677_v20 }
 0x11b   : > { %707 = vrot.lane.b32.xlu1 %v680_v25, %s2618_s27  ;;  %705 = vrot.lane.b32.xlu0 %v680_v25, %s2619_s24  ;;  %v778_v29 = vsel %vm727_vm2, %v2848_v26, 0 }
 0x11f   : > { %2191 = vmatmul.mubr.msk.bf16.vlgmr.msra.gmra.mxu1 %vm727_vm2, %v2114_v27  ;;  %684 = vrot.lane.b32.xlu1 %v607_v28, %s2618_s27  ;;  %s519_s27 = scalar_lea.vmem [#allocation8], %s2042_s15  ;;  %s2547_s15 = scalar_lea.vmem %s2546_s18, 512 }
 0x120   : > { %682 = vrot.lane.b32.xlu0 %v607_v28, %s2619_s24  ;;  %2195 = vmatpush3.bf16.xpose.msra.mxu1 %v778_v29  ;;  %s1927_s24 = sshll.u32 %s519_s27, 4  ;;  %s3090_s24 = int_to_ptr.vmem [resolvable:$true] %s1927_s24 }
 0x121   : > { %2196 = vmatprep.mubr.msk.bf16.mxu1 %vm2617_vm0, %v2616_v0  ;;  %2206 = vmatprep.subr.bf16.mxu1 %v2616_v0  ;;  %p2548_p8 = scmp.lt.s32.totalorder %s3090_s24, %s2546_s18 }
 0x123   : > { %686 = vrot.lane.b32.xlu1 %v607_v28, %s2620_s21 }
 0x124   : > { %709 = vrot.lane.b32.xlu0 %v680_v25, %s2620_s21 }
 0x127   : > { %2197 = vmatmul.mubr.msk.bf16.vlgmr.msra.gmra.mxu1 %vm727_vm2, %v2115_v30  ;;  %1192 = vrot.lane.b32.xlu1 %v2116_v17, %s2621_s22 }
 0x128   : > { %2208 = vmatprep.mubr.msk.bf16.mxu1 %vm2617_vm0, %v2616_v0 }
 0x18d   : > { %v706_v31 = vpop.permute.xlu0 %705  ;;  %v708_v36 = vpop.permute.xlu1 %707 }
 0x18e   : > { %v2860_v32 = vcombine.low %v706_v31, %v706_v31  ;;  %v2862_v33 = vcombine.high %v706_v31, %v706_v31  ;;  %v2870_v38 = vcombine.low %v708_v36, %v708_v36  ;;  %v2872_v39 = vcombine.high %v708_v36, %v708_v36 }
 0x190   : > { %v824_v34 = vsel %vm727_vm2, %v2860_v32, 0  ;;  %v870_v35 = vsel %vm727_vm2, %v2862_v33, 0  ;;  %v916_v42 = vsel %vm727_vm2, %v2870_v38, 0  ;;  %v962_v43 = vsel %vm727_vm2, %v2872_v39, 0 }
 0x191   : > { %2201 = vmatpush3.bf16.xpose.msra.mxu0 %v824_v34  ;;  %2207 = vmatpush3.bf16.xpose.msra.mxu1 %v870_v35  ;;  %v685_v44 = vpop.permute.xlu1 %684 }
 0x192   : > { %2212 = vmatprep.subr.bf16.mxu0 %v2616_v0  ;;  %2218 = vmatprep.subr.bf16.mxu1 %v2616_v0  ;;  %v683_v37 = vpop.permute.xlu0 %682  ;;  %v2060_v48 = vcombine.low %v685_v44, %v685_v44  ;;  %v2061_v49 = vcombine.high %v685_v44, %v685_v44 }
 0x193   : > { %v2058_v40 = vcombine.low %v683_v37, %v683_v37  ;;  %v2059_v41 = vcombine.high %v683_v37, %v683_v37 }
 0x195   : > { %v687_v50 = vpop.permute.xlu1 %686 }
 0x196   : > { %v710_v45 = vpop.permute.xlu0 %709  ;;  %v2062_v54 = vcombine.low %v687_v50, %v687_v50  ;;  %v2063_v55 = vcombine.high %v687_v50, %v687_v50 }
 0x197   : > { %v2886_v46 = vcombine.low %v710_v45, %v710_v45  ;;  %v2888_v47 = vcombine.high %v710_v45, %v710_v45 }
 0x198   : > { %2203 = vmatmul.mubr.msk.bf16.vlgmr.msra.gmra.mxu0 %vm727_vm2, %v2058_v40  ;;  %2209 = vmatmul.mubr.msk.bf16.vlgmr.msra.gmra.mxu1 %vm727_vm2, %v2059_v41 }
 0x199   : > { %2213 = vmatpush3.bf16.xpose.msra.mxu0 %v916_v42  ;;  %2219 = vmatpush3.bf16.xpose.msra.mxu1 %v962_v43  ;;  %v1008_v51 = vsel %vm727_vm2, %v2886_v46, 0  ;;  %v1054_v52 = vsel %vm727_vm2, %v2888_v47, 0  ;;  %v1193_v53 = vpop.permute.xlu1 %1192 }
 0x19a   : > { %2214 = vmatprep.mubr.msk.bf16.mxu0 %vm2617_vm0, %v2616_v0  ;;  %2220 = vmatprep.mubr.msk.bf16.mxu1 %vm2617_vm0, %v2616_v0  ;;  %v1199_v56 = vsel %vm1197_vm3, %v1193_v53, 0 }
 0x19b   : > { %2224 = vmatprep.subr.bf16.mxu0 %v2616_v0  ;;  %2230 = vmatprep.subr.bf16.mxu1 %v2616_v0 }
 0x1a0   : > { %2215 = vmatmul.mubr.msk.bf16.vlgmr.msra.gmra.mxu0 %vm727_vm2, %v2060_v48  ;;  %2221 = vmatmul.mubr.msk.bf16.vlgmr.msra.gmra.mxu1 %vm727_vm2, %v2061_v49 }
 0x1a1   : > { %2225 = vmatpush3.bf16.xpose.msra.mxu0 %v1008_v51  ;;  %2231 = vmatpush3.bf16.xpose.msra.mxu1 %v1054_v52 }
 0x1a2   : > { %2226 = vmatprep.mubr.msk.bf16.mxu0 %vm2617_vm0, %v2616_v0  ;;  %2232 = vmatprep.mubr.msk.bf16.mxu1 %vm2617_vm0, %v2616_v0 }
 0x1a3   : > { %2236 = vmatprep.subr.bf16.mxu0 %v2616_v0  ;;  %2242 = vmatprep.subr.bf16.mxu1 %v2616_v0 }
 0x1a8   : > { %2227 = vmatmul.mubr.msk.bf16.vlgmr.msra.gmra.mxu0 %vm727_vm2, %v2062_v54  ;;  %2233 = vmatmul.mubr.msk.bf16.vlgmr.msra.gmra.mxu1 %vm727_vm2, %v2063_v55 }
 0x1a9   : > { %2237 = vmatpush3.bf16.msra.mxu0 %v1199_v56  ;;  %2244 = vmatprep.mubr.msk.bf16.mxu1 %vm2617_vm0, %v2616_v0 }
 0x1aa   : > { %2238 = vmatprep.mubr.msk.bf16.mxu0 %vm2617_vm0, %v2616_v0  ;;  %2248 = vmatprep.subr.bf16.mxu0 %v2616_v0 }
 0x1df   : > { %v768_v57 = vpop.f32.mrf.mxu1 }
 0x1e0   : > { %v1096_v58 = vsel %vm727_vm2, %v768_v57, -inf }
 0x1e1   : > { %1097 = vmax.xlane.f32.xlu0 %v1096_v58  ;;  %v2192_v59 = vpop.f32.mrf.mxu1 }
 0x1e3   : > { %v771_v60 = vpop.f32.mrf.mxu1 }
 0x1e5   : > { %v2193_v61 = vpop.f32.mrf.mxu1 }
 0x1e7   : > { %v814_v62 = vpop.f32.mrf.mxu1 }
 0x1e8   : > { %v1099_v63 = vsel %vm727_vm2, %v814_v62, -inf }
 0x1e9   : > { %1100 = vmax.xlane.f32.xlu1 %v1099_v63  ;;  %v2198_v1 = vpop.f32.mrf.mxu1 }
 0x1eb   : > { %v817_v2 = vpop.f32.mrf.mxu1 }
 0x1ed   : > { %v2199_v5 = vpop.f32.mrf.mxu1 }
 0x258   : > { %v860_v6 = vpop.f32.mrf.mxu0  ;;  %v906_v7 = vpop.f32.mrf.mxu1 }
 0x259   : > { %v1102_v8 = vsel %vm727_vm2, %v860_v6, -inf  ;;  %v1105_v13 = vsel %vm727_vm2, %v906_v7, -inf }
 0x25a   : > { %v2204_v9 = vpop.f32.mrf.mxu0  ;;  %1103 = vmax.xlane.f32.xlu0 %v1102_v8  ;;  %v2210_v10 = vpop.f32.mrf.mxu1 }
 0x25c   : > { %v863_v11 = vpop.f32.mrf.mxu0  ;;  %v909_v12 = vpop.f32.mrf.mxu1 }
 0x25e   : > { %v2205_v14 = vpop.f32.mrf.mxu0  ;;  %1106 = vmax.xlane.f32.xlu0 %v1105_v13  ;;  %v2211_v15 = vpop.f32.mrf.mxu1 }
 0x260   : > { %v2914_v16 = vpop.f32.mrf.mxu0  ;;  %v2916_v17 = vpop.f32.mrf.mxu1 }
 0x261   : > { %v1108_v18 = vsel %vm727_vm2, %v2914_v16, -inf  ;;  %v1111_v19 = vsel %vm727_vm2, %v2916_v17, -inf }
 0x262   : > { %v2216_v20 = vpop.f32.mrf.mxu0  ;;  %1109 = vmax.xlane.f32.xlu1 %v1108_v18  ;;  %1112 = vmax.xlane.f32.xlu0 %v1111_v19  ;;  %v2222_v21 = vpop.f32.mrf.mxu1 }
 0x264   : > { %v955_v22 = vpop.f32.mrf.mxu0  ;;  %v1001_v23 = vpop.f32.mrf.mxu1 }
 0x266   : > { %v2217_v24 = vpop.f32.mrf.mxu0  ;;  %v2223_v25 = vpop.f32.mrf.mxu1 }
 0x268   : > { %v1044_v27 = vpop.f32.mrf.mxu0  ;;  %v1090_v28 = vpop.f32.mrf.mxu1 }
 0x269   : > { %v1114_v29 = vsel %vm727_vm2, %v1044_v27, -inf  ;;  %v1117_v30 = vsel %vm727_vm2, %v1090_v28, -inf }
 0x26a   : > { %v2228_v31 = vpop.f32.mrf.mxu0  ;;  %1115 = vmax.xlane.f32.xlu1 %v1114_v29  ;;  %1118 = vmax.xlane.f32.xlu0 %v1117_v30  ;;  %v2234_v34 = vpop.f32.mrf.mxu1 }
 0x26b   : > { %v1098_v43 = vpop.xlane.xlu0 %1097 }
 0x26c   : > { %v1047_v35 = vpop.f32.mrf.mxu0  ;;  %v1093_v36 = vpop.f32.mrf.mxu1  ;;  %v1120_v44 = vsub.f32 %v768_v57, %v1098_v43 }
 0x26e   : > { %v2229_v37 = vpop.f32.mrf.mxu0  ;;  %v2235_v40 = vpop.f32.mrf.mxu1  ;;  %v1128_v48 = vmul.f32 1.442695, %v1120_v44 }
 0x272   : > { %v1101_v41 = vpop.xlane.xlu1 %1100 }
 0x273   : > { %v1121_v42 = vsub.f32 %v814_v62, %v1101_v41 }
 0x275   : > { %v1130_v45 = vmul.f32 1.442695, %v1121_v42 }
 0x277   : > { %2419 = vpow2.f32 %v1130_v45 }
 0x278   : > { %2421 = vpow2.f32 %v1128_v48 }
 0x27b   : > { %1289 = vrot.lane.b32.xlu1 %v2860_v32, %s2621_s22 }
 0x27f   : > { %1337 = vrot.lane.b32.xlu1 %v2862_v33, %s2621_s22 }
 0x280   : > { %1241 = vrot.lane.b32.xlu0 %v2848_v26, %s2621_s22 }
 0x284   : > { %v2420_v49 = vpop.eup %2419 }
 0x285   : > { %v1147_v50 = vsel %vm727_vm2, %v2420_v49, 0.0  ;;  %v2931_v51 = vpop.eup %2421 }
 0x286   : > { %v1144_v32 = vsel %vm727_vm2, %v2931_v51, 0.0 }
 0x29f   : > { %1148 = vadd.xlane.f32.xlu0 %v1147_v50 }
 0x2a3   : > { %1145 = vadd.xlane.f32.xlu1 %v1144_v32 }
 0x2e3   : > { %v1104_v33 = vpop.xlane.xlu0 %1103 }
 0x2e4   : > { %v1122_v26 = vsub.f32 %v860_v6, %v1104_v33 }
 0x2e6   : > { %v1132_v52 = vmul.f32 1.442695, %v1122_v26 }
 0x2e7   : > { %v1107_v53 = vpop.xlane.xlu0 %1106 }
 0x2e8   : > { %2423 = vpow2.f32 %v1132_v52  ;;  %v1123_v54 = vsub.f32 %v906_v7, %v1107_v53 }
 0x2ea   : > { %v1134_v55 = vmul.f32 1.442695, %v1123_v54 }
 0x2eb   : > { %v1113_v56 = vpop.xlane.xlu0 %1112  ;;  %v1110_v1 = vpop.xlane.xlu1 %1109 }
 0x2ec   : > { %2425 = vpow2.f32 %v1134_v55  ;;  %v1124_v2 = vsub.f32 %v2914_v16, %v1110_v1  ;;  %v1125_v6 = vsub.f32 %v2916_v17, %v1113_v56 }
 0x2ee   : > { %v1136_v7 = vmul.f32 1.442695, %v1124_v2  ;;  %v1138_v9 = vmul.f32 1.442695, %v1125_v6 }
 0x2f0   : > { %2427 = vpow2.f32 %v1136_v7 }
 0x2f1   : > { %2429 = vpow2.f32 %v1138_v9 }
 0x2f3   : > { %v1119_v57 = vpop.xlane.xlu0 %1118  ;;  %v1116_v5 = vpop.xlane.xlu1 %1115 }
 0x2f4   : > { %v1126_v8 = vsub.f32 %v1044_v27, %v1116_v5  ;;  %v1127_v11 = vsub.f32 %v1090_v28, %v1119_v57 }
 0x2f5   : > { %v2935_v58 = vpop.eup %2423 }
 0x2f6   : > { %v1150_v59 = vsel %vm727_vm2, %v2935_v58, 0.0  ;;  %v1140_v10 = vmul.f32 1.442695, %v1126_v8  ;;  %v1142_v12 = vmul.f32 1.442695, %v1127_v11 }
 0x2f7   : > { %1151 = vadd.xlane.f32.xlu1 %v1150_v59  ;;  %v1242_v60 = vpop.permute.xlu0 %1241  ;;  %v1290_v13 = vpop.permute.xlu1 %1289 }
 0x2f8   : > { %v1247_v61 = vsel %vm1197_vm3, %v1242_v60, 0  ;;  %2431 = vpow2.f32 %v1140_v10  ;;  %v1295_v31 = vsel %vm1197_vm3, %v1290_v13, 0 }
 0x2f9   : > { %v2940_v62 = vpop.eup %2425  ;;  %2243 = vmatpush3.bf16.msra.mxu1 %v1247_v61  ;;  %2433 = vpow2.f32 %v1142_v12 }
 0x2fa   : > { %v1153_v63 = vsel %vm727_vm2, %v2940_v62, 0.0  ;;  %2254 = vmatprep.subr.bf16.mxu1 %v2616_v0 }
 0x2fb   : > { %1154 = vadd.xlane.f32.xlu0 %v1153_v63  ;;  %v1338_v14 = vpop.permute.xlu1 %1337 }
 0x2fc   : > { %v1343_v28 = vsel %vm1197_vm3, %v1338_v14, 0 }
 0x308   : > { %1433 = vrot.lane.b32.xlu1 %v2872_v39, %s2621_s22  ;;  %v2951_v39 = vpop.eup %2427 }
 0x309   : > { %v2953_v15 = vpop.eup %2429  ;;  %v1156_v16 = vsel %vm727_vm2, %v2951_v39, 0.0 }
 0x30a   : > { %v2957_v17 = vpop.eup %2431  ;;  %v1159_v20 = vsel %vm727_vm2, %v2953_v15, 0.0 }
 0x30b   : > { %v1162_v19 = vsel %vm727_vm2, %v2957_v17, 0.0  ;;  %v2963_v21 = vpop.eup %2433 }
 0x30c   : > { %v1165_v22 = vsel %vm727_vm2, %v2963_v21, 0.0 }
 0x311   : > { %1385 = vrot.lane.b32.xlu0 %v2870_v38, %s2621_s22 }
 0x328   : > { %v1149_v38 = vpop.xlane.xlu0 %1148 }
 0x329   : > { %2435 = vrcp.f32 %v1149_v38 }
 0x32c   : > { %1157 = vadd.xlane.f32.xlu1 %v1156_v16  ;;  %v1146_v18 = vpop.xlane.xlu1 %1145 }
 0x32d   : > { %2437 = vrcp.f32 %v1146_v18 }
 0x330   : > { %1163 = vadd.xlane.f32.xlu1 %v1162_v19  ;;  %1160 = vadd.xlane.f32.xlu0 %v1159_v20  ;;  %v2407_v20 = vld [vmem:[#allocation2 + $0x8] sm:$0xff]  }
 0x334   : > { %1166 = vadd.xlane.f32.xlu0 %v1165_v22 }
 0x336   : > { %v2436_v23 = vpop.eup %2435 }
 0x337   : > { %v1177_v24 = vmul.f32 %v2436_v23, %v2420_v49 }
 0x339   : > { %v1185_v25 = vpack.c.bf16 %v1177_v24, %v1177_v24 }
 0x33a   : > { %v2438_v27 = vpop.eup %2437 }
 0x33b   : > { %2245 = vmatmul.mubr.msk.bf16.vlgmr.msra.gmra.mxu1 %vm727_vm2, %v1185_v25  ;;  %v1176_v29 = vmul.f32 %v2438_v27, %v2931_v51 }
 0x33c   : > { %2255 = vmatpush3.bf16.msra.mxu1 %v1343_v28  ;;  %2256 = vmatprep.mubr.msk.bf16.mxu1 %vm2617_vm0, %v2616_v0 }
 0x33d   : > { %v1184_v30 = vpack.c.bf16 %v1176_v29, %v1176_v29  ;;  %2266 = vmatprep.subr.bf16.mxu1 %v2616_v0 }
 0x33f   : > { %2239 = vmatmul.mubr.msk.bf16.vlgmr.msra.gmra.mxu0 %vm727_vm2, %v1184_v30 }
 0x340   : > { %2249 = vmatpush3.bf16.msra.mxu0 %v1295_v31  ;;  %2250 = vmatprep.mubr.msk.bf16.mxu0 %vm2617_vm0, %v2616_v0 }
 0x341   : > { %1529 = vrot.lane.b32.xlu1 %v2888_v47, %s2621_s22  ;;  %2260 = vmatprep.subr.bf16.mxu0 %v2616_v0 }
 0x34a   : > { %1481 = vrot.lane.b32.xlu0 %v2886_v46, %s2621_s22 }
 0x380   : > { %v1152_v34 = vpop.xlane.xlu1 %1151 }
 0x381   : > { %2439 = vrcp.f32 %v1152_v34 }
 0x384   : > { %v1155_v35 = vpop.xlane.xlu0 %1154  ;;  %v1434_v44 = vpop.permute.xlu1 %1433 }
 0x385   : > { %2441 = vrcp.f32 %v1155_v35  ;;  %v1439_v45 = vsel %vm1197_vm3, %v1434_v44, 0 }
 0x388   : > { %v1386_v40 = vpop.permute.xlu0 %1385 }
 0x389   : > { %v1391_v43 = vsel %vm1197_vm3, %v1386_v40, 0 }
 0x38e   : > { %v2440_v36 = vpop.eup %2439 }
 0x38f   : > { %v1178_v37 = vmul.f32 %v2440_v36, %v2935_v58 }
 0x391   : > { %v1186_v41 = vpack.c.bf16 %v1178_v37, %v1178_v37 }
 0x392   : > { %v2442_v42 = vpop.eup %2441 }
 0x393   : > { %2251 = vmatmul.mubr.msk.bf16.vlgmr.msra.gmra.mxu0 %vm727_vm2, %v1186_v41  ;;  %v1179_v47 = vmul.f32 %v2442_v42, %v2940_v62 }
 0x394   : > { %2261 = vmatpush3.bf16.msra.mxu0 %v1391_v43  ;;  %2262 = vmatprep.mubr.msk.bf16.mxu0 %vm2617_vm0, %v2616_v0 }
 0x395   : > { %v1187_v46 = vpack.c.bf16 %v1179_v47, %v1179_v47  ;;  %2272 = vmatprep.subr.bf16.mxu0 %v2616_v0 }
 0x397   : > { %2257 = vmatmul.mubr.msk.bf16.vlgmr.msra.gmra.mxu1 %vm727_vm2, %v1187_v46 }
 0x398   : > { %2267 = vmatpush3.bf16.msra.mxu1 %v1439_v45  ;;  %2268 = vmatprep.mubr.msk.bf16.mxu1 %vm2617_vm0, %v2616_v0 }
 0x399   : > { %2278 = vmatprep.subr.bf16.mxu1 %v2616_v0 }
 0x3b5   : > { %v1158_v48 = vpop.xlane.xlu1 %1157 }
 0x3b6   : > { %2443 = vrcp.f32 %v1158_v48 }
 0x3b9   : > { %v1164_v49 = vpop.xlane.xlu1 %1163  ;;  %v1161_v50 = vpop.xlane.xlu0 %1160 }
 0x3ba   : > { %2445 = vrcp.f32 %v1164_v49 }
 0x3bb   : > { %2447 = vrcp.f32 %v1161_v50 }
 0x3bd   : > { %v1167_v51 = vpop.xlane.xlu0 %1166  ;;  %v1530_v57 = vpop.permute.xlu1 %1529 }
 0x3be   : > { %2449 = vrcp.f32 %v1167_v51  ;;  %v1535_v61 = vsel %vm1197_vm3, %v1530_v57, 0  ;;  %v2088_v51 = vld [vmem:[%s3141_s7] ss:$0 sm:$0xff] }
 0x3c1   : > { %v1482_v26 = vpop.permute.xlu0 %1481 }
 0x3c2   : > { %v1487_v55 = vsel %vm1197_vm3, %v1482_v26, 0 }
 0x3c3   : > { %v2444_v32 = vpop.eup %2443 }
 0x3c4   : > { %v1180_v33 = vmul.f32 %v2444_v32, %v2951_v39 }
 0x3c6   : > { %v1188_v52 = vpack.c.bf16 %v1180_v33, %v1180_v33 }
 0x3c7   : > { %v2446_v53 = vpop.eup %2445 }
 0x3c8   : > { %v2448_v54 = vpop.eup %2447  ;;  %2263 = vmatmul.mubr.msk.bf16.vlgmr.msra.gmra.mxu0 %vm727_vm2, %v1188_v52  ;;  %v1182_v58 = vmul.f32 %v2446_v53, %v2957_v17 }
 0x3c9   : > { %2273 = vmatpush3.bf16.msra.mxu0 %v1487_v55  ;;  %v1181_v56 = vmul.f32 %v2448_v54, %v2953_v15  ;;  %2274 = vmatprep.mubr.msk.bf16.mxu0 %vm2617_vm0, %v2616_v0 }
 0x3ca   : > { %2284 = vmatprep.subr.bf16.mxu0 %v2616_v0  ;;  %v1190_v62 = vpack.c.bf16 %v1182_v58, %v1182_v58 }
 0x3cb   : > { %v1189_v59 = vpack.c.bf16 %v1181_v56, %v1181_v56  ;;  %v2450_v60 = vpop.eup %2449 }
 0x3cc   : > { %v1183_v63 = vmul.f32 %v2450_v60, %v2963_v21  ;;  %v2408_v21 = vld [vmem:[#allocation2] sm:$0xff]  }
 0x3cd   : > { %2269 = vmatmul.mubr.msk.bf16.vlgmr.msra.gmra.mxu1 %vm727_vm2, %v1189_v59 }
 0x3ce   : > { %2279 = vmatpush3.bf16.msra.mxu1 %v1535_v61  ;;  %2280 = vmatprep.mubr.msk.bf16.mxu1 %vm2617_vm0, %v2616_v0  ;;  %v1191_v1 = vpack.c.bf16 %v1183_v63, %v1183_v63 }
 0x3cf   : > { %2292 = vmatprep.subr.bf16.mxu1 %v2616_v0 }
 0x3d0   : > { %2275 = vmatmul.mubr.msk.bf16.vlgmr.msra.gmra.mxu0 %vm727_vm2, %v1190_v62 }
 0x3d1   : > { %2288 = vmatprep.mubr.msk.bf16.mxu0 %vm2617_vm0, %v2616_v0  ;;  %2285 = vmatpush3.bf16.msra.mxu0 %v2407_v20 }
 0x3d2   : > { %2286 = vmatprep.subr.bf16.mxu0 %v2616_v0 }
 0x3d5   : > { %2281 = vmatmul.mubr.msk.bf16.vlgmr.msra.gmra.mxu1 %vm727_vm2, %v1191_v1  ;;  %2287 = vmatpush3.bf16.msra.mxu0 %v2408_v21 }
 0x3d6   : > { %2296 = vmatprep.mubr.msk.bf16.mxu1 %vm2617_vm0, %v2616_v0  ;;  %2300 = vmatprep.subr.bf16.mxu0 %v2616_v0 }
 0x3fb   : > { %v1283_v2 = vpop.f32.mrf.mxu1 }
 0x3fd   : > { %v2246_v5 = vpop.f32.mrf.mxu1 }
 0x3ff   : > { %v1235_v6 = vpop.f32.mrf.mxu0  ;;  %v1286_v7 = vpop.f32.mrf.mxu1 }
 0x400   : > { %v1577_v8 = vpack.c.bf16 %v1283_v2, %v1235_v6  ;;  %v2409_v6 = vld [vmem:[#allocation5 + $0x8] sm:$0xff]   ;;  %v2410_v7 = vld [vmem:[#allocation5] sm:$0xff]  }
 0x401   : > { %v2240_v9 = vpop.f32.mrf.mxu0  ;;  %v2247_v10 = vpop.f32.mrf.mxu1  ;;  %2293 = vmatpush3.bf16.msra.mxu1 %v2409_v6 }
 0x402   : > { %2294 = vmatprep.subr.bf16.mxu1 %v2616_v0 }
 0x403   : > { %v1238_v11 = vpop.f32.mrf.mxu0 }
 0x405   : > { %v2241_v12 = vpop.f32.mrf.mxu0  ;;  %2295 = vmatpush3.bf16.msra.mxu1 %v2410_v7 }
 0x453   : > { %v1331_v13 = vpop.f32.mrf.mxu0 }
 0x455   : > { %v2252_v39 = vpop.f32.mrf.mxu0 }
 0x457   : > { %v1334_v14 = vpop.f32.mrf.mxu0  ;;  %v1379_v38 = vpop.f32.mrf.mxu1 }
 0x458   : > { %v1578_v15 = vpack.c.bf16 %v1379_v38, %v1331_v13  ;;  %v2092_v38 = vld [vmem:[%s3142_s8] ss:$0 sm:$0xff] }
 0x459   : > { %v2253_v16 = vpop.f32.mrf.mxu0  ;;  %v2258_v17 = vpop.f32.mrf.mxu1 }
 0x45a   : > { %1582 = vrot.lane.b32.xlu0 %v1578_v15, %s2622_s29 }
 0x45b   : > { %v1382_v18 = vpop.f32.mrf.mxu1 }
 0x45c   : > { %v2093_v18 = vld [vmem:[%s3143_s9] ss:$0 sm:$0xff] }
 0x45d   : > { %v2259_v19 = vpop.f32.mrf.mxu1 }
 0x488   : > { %v1427_v22 = vpop.f32.mrf.mxu0 }
 0x48a   : > { %v2264_v23 = vpop.f32.mrf.mxu0 }
 0x48b   : > { %v2411_v23 = vld [vmem:[%s3146_s12 + $0x38] sm:$0xff]  }
 0x48c   : > { %v1430_v24 = vpop.f32.mrf.mxu0 }
 0x48d   : > { %v1475_v25 = vpop.f32.mrf.mxu1  ;;  %v2412_v24 = vld [vmem:[%s3146_s12 + $0x30] sm:$0xff]  }
 0x48e   : > { %v1579_v27 = vpack.c.bf16 %v1475_v25, %v1427_v22  ;;  %v2265_v28 = vpop.f32.mrf.mxu0  ;;  %v2413_v25 = vld [vmem:[%s3146_s12 + $0x28] sm:$0xff]  }
 0x48f   : > { %v2270_v29 = vpop.f32.mrf.mxu1  ;;  %v2415_v28 = vld [vmem:[%s3146_s12 + $0x18] sm:$0xff]  }
 0x490   : > { %1585 = vrot.lane.b32.xlu1 %v1579_v27, %s2623_s25  ;;  %v1523_v30 = vpop.f32.mrf.mxu0  ;;  %v2414_v27 = vld [vmem:[%s3146_s12 + $0x20] sm:$0xff]   ;;  %v2416_v29 = vld [vmem:[%s3146_s12 + $0x10] sm:$0xff]   ;;  %s3087_s25 = scalar_lea.hbm %s3148_s14, %s2118_s19 }
 0x491   : > { %v1478_v31 = vpop.f32.mrf.mxu1 }
 0x492   : > { %v2276_v34 = vpop.f32.mrf.mxu0  ;;  %v2418_v31 = vld [vmem:[%s3146_s12] sm:$0xff]  }
 0x493   : > { %v2271_v35 = vpop.f32.mrf.mxu1  ;;  %v2094_v34 = vld [vmem:[#allocation7] ss:$0 sm:$0xff] }
 0x494   : > { %v1526_v36 = vpop.f32.mrf.mxu0 }
 0x495   : > { %v1571_v37 = vpop.f32.mrf.mxu1 }
 0x496   : > { %v1580_v40 = vpack.c.bf16 %v1571_v37, %v1523_v30  ;;  %v2277_v41 = vpop.f32.mrf.mxu0  ;;  %v2417_v30 = vld [vmem:[%s3146_s12 + $0x8] sm:$0xff]  }
 0x497   : > { %v2282_v42 = vpop.f32.mrf.mxu1 }
 0x498   : > { %1588 = vrot.lane.b32.xlu0 %v1580_v40, %s2624_s28  ;;  %s2541_s28 = scalar_lea.vmem %s3090_s24, 256 }
 0x499   : > { %v1574_v43 = vpop.f32.mrf.mxu1  ;;  %p2542_p12 = scmp.ne.s32.totalorder %s3090_s24, %s2541_s28  ;;  %p2549_p11 = scmp.lt.s32.totalorder %s2547_s15, %s2541_s28 }
 0x49b   : > { %v2283_v47 = vpop.f32.mrf.mxu1  ;;  %p2543_p4 = pnand %p2542_p12, %p2740_p5  ;;  %p2550_p0 = por %p2549_p11, %p2548_p8 }
 0x49d   : > { %p2544_p7 = pneg %p2543_p4 }
 0x49f   : > { %p2551_p6 = pnand %p2550_p0, %p2544_p7 }
 0x4cc   : > { %v1583_v44 = vpop.permute.xlu0 %1582 }
 0x4cd   : > { %v1592_v45 = vsel %vm727_vm2, %v1577_v8, %v1583_v44 }
 0x502   : > { %v1586_v46 = vpop.permute.xlu1 %1585 }
 0x503   : > { %v1595_v48 = vsel %vm1593_vm4, %v1592_v45, %v1586_v46 }
 0x50a   : > { %v1589_v49 = vpop.permute.xlu0 %1588 }
 0x50b   : > { %v1598_v50 = vsel %vm1596_vm5, %v1595_v48, %v1589_v49 }
 0x50c   : > { %2289 = vmatmul.mubr.msk.bf16.vlgmr.msra.gmra.mxu0 %vm562_vm1, %v1598_v50 }
 0x50d   : > { %2316 = vmatprep.mubr.msk.bf16.mxu0 %vm2617_vm0, %v2616_v0  ;;  %2301 = vmatpush3.bf16.msra.mxu0 %v2411_v23 }
 0x50e   : > { %2302 = vmatprep.subr.bf16.mxu0 %v2616_v0 }
 0x511   : > { %2303 = vmatpush3.bf16.msra.mxu0 %v2412_v24 }
 0x512   : > { %2304 = vmatprep.subr.bf16.mxu0 %v2616_v0 }
 0x515   : > { %2305 = vmatpush3.bf16.msra.mxu0 %v2413_v25 }
 0x516   : > { %2306 = vmatprep.subr.bf16.mxu0 %v2616_v0 }
 0x519   : > { %2307 = vmatpush3.bf16.msra.mxu0 %v2414_v27 }
 0x51a   : > { %2308 = vmatprep.subr.bf16.mxu0 %v2616_v0 }
 0x51d   : > { %2309 = vmatpush3.bf16.msra.mxu0 %v2415_v28 }
 0x51e   : > { %2310 = vmatprep.subr.bf16.mxu0 %v2616_v0 }
 0x521   : > { %2311 = vmatpush3.bf16.msra.mxu0 %v2416_v29 }
 0x522   : > { %2312 = vmatprep.subr.bf16.mxu0 %v2616_v0 }
 0x525   : > { %2313 = vmatpush3.bf16.msra.mxu0 %v2417_v30 }
 0x526   : > { %2314 = vmatprep.subr.bf16.mxu0 %v2616_v0 }
 0x529   : > { %2315 = vmatpush3.bf16.msra.mxu0 %v2418_v31 }
 0x5cc   : > { %v1658_v32 = vpop.f32.mrf.mxu0 }
 0x5cd   : > { %v1659_v33 = vadd.f32 %v2088_v51, %v1658_v32 }
 0x5ce   : > { %v2290_v26 = vpop.f32.mrf.mxu0 }
 0x5cf   : > { %v3025_v52 = vadd.f32 %v1659_v33, %v2815_v3 }
 0x5d0   : > { %v1661_v53 = vpop.f32.mrf.mxu0 }
 0x5d1   : > { %v1662_v54 = vadd.f32 %v2088_v51, %v1661_v53  ;;  %v1669_v55 = vsel %vm562_vm1, %v3025_v52, 0.0  ;;  %v2100_v53 = vld [vmem:[%s3147_s13] ss:$0 sm:$0xff] }
 0x5d2   : > { %1670 = vadd.xlane.f32.xlu1 %v1669_v55  ;;  %v2291_v56 = vpop.f32.mrf.mxu0 }
 0x5d3   : > { %v3030_v57 = vadd.f32 %v1662_v54, %v2817_v4 }
 0x5d5   : > { %v1672_v58 = vsel %vm562_vm1, %v3030_v57, 0.0 }
 0x5d6   : > { %1673 = vadd.xlane.f32.xlu0 %v1672_v58 }
 0x65b   : > { %v1671_v59 = vpop.xlane.xlu1 %1670 }
 0x65c   : > { %v1676_v60 = vmul.f32 0.03125, %v1671_v59 }
 0x65e   : > { %v1678_v61 = vsub.f32 %v3025_v52, %v1676_v60 }
 0x65f   : > { %v1674_v3 = vpop.xlane.xlu0 %1673 }
 0x660   : > { %v1677_v62 = vmul.f32 0.03125, %v1674_v3  ;;  %v1680_v63 = vmul.f32 %v1678_v61, %v1678_v61 }
 0x662   : > { %v1679_v1 = vsub.f32 %v3030_v57, %v1677_v62  ;;  %v1682_v2 = vsel %vm562_vm1, %v1680_v63, 0.0 }
 0x663   : > { %1683 = vadd.xlane.f32.xlu0 %v1682_v2 }
 0x664   : > { %v1681_v5 = vmul.f32 %v1679_v1, %v1679_v1 }
 0x666   : > { %v1685_v4 = vsel %vm562_vm1, %v1681_v5, 0.0 }
 0x667   : > { %1686 = vadd.xlane.f32.xlu1 %v1685_v4 }
 0x6ec   : > { %v1684_v8 = vpop.xlane.xlu0 %1683 }
 0x6ed   : > { %v1688_v9 = vmul.f32 0.03125, %v1684_v8 }
 0x6ef   : > { %v1690_v10 = vadd.f32 1e-05, %v1688_v9 }
 0x6f0   : > { %v1687_v11 = vpop.xlane.xlu1 %1686 }
 0x6f1   : > { %2451 = vrsqrt.f32 %v1690_v10  ;;  %v1689_v12 = vmul.f32 0.03125, %v1687_v11 }
 0x6f3   : > { %v1691_v13 = vadd.f32 1e-05, %v1689_v12 }
 0x6f5   : > { %2453 = vrsqrt.f32 %v1691_v13 }
 0x6fe   : > { %v2452_v39 = vpop.eup %2451 }
 0x6ff   : > { %v1694_v14 = vmul.f32 %v2452_v39, %v1678_v61 }
 0x701   : > { %v1702_v17 = vmul.f32 %v2092_v38, %v1694_v14 }
 0x702   : > { %v2454_v15 = vpop.eup %2453 }
 0x703   : > { %v1695_v16 = vmul.f32 %v2454_v15, %v1679_v1  ;;  %v1710_v20 = vadd.f32 %v2093_v18, %v1702_v17 }
 0x705   : > { %v1703_v19 = vmul.f32 %v2092_v38, %v1695_v16 }
 0x707   : > { %v1711_v21 = vadd.f32 %v2093_v18, %v1703_v19 }
 0x709   : > { %v1712_v22 = vpack.c.bf16 %v1711_v21, %v1710_v20 }
 0x70b   : > { %2297 = vmatmul.mubr.msk.bf16.vlgmr.msra.gmra.mxu1 %vm562_vm1, %v1712_v22 }
 0x7cb   : > { %v1773_v35 = vpop.f32.mrf.mxu1 }
 0x7cc   : > { %v1774_v36 = vadd.f32 %v2094_v34, %v1773_v35 }
 0x7cd   : > { %v2298_v37 = vpop.f32.mrf.mxu1 }
 0x7ce   : > { %v2098_v40 = vmul.f32 -1.702, %v1774_v36 }
 0x7cf   : > { %v1776_v41 = vpop.f32.mrf.mxu1 }
 0x7d0   : > { %v1784_v42 = vmul.f32 1.442695, %v2098_v40  ;;  %v1777_v43 = vadd.f32 %v2094_v34, %v1776_v41 }
 0x7d1   : > { %v2299_v47 = vpop.f32.mrf.mxu1 }
 0x7d2   : > { %2455 = vpow2.f32 %v1784_v42  ;;  %v2099_v44 = vmul.f32 -1.702, %v1777_v43 }
 0x7d4   : > { %v1786_v46 = vmul.f32 1.442695, %v2099_v44 }
 0x7d6   : > { %2457 = vpow2.f32 %v1786_v46 }
 0x7df   : > { %v2456_v0 = vpop.eup %2455 }
 0x7e0   : > { %v1788_v45 = vadd.f32 1.0, %v2456_v0 }
 0x7e2   : > { %2459 = vrcp.f32 %v1788_v45 }
 0x7e3   : > { %v2458_v48 = vpop.eup %2457 }
 0x7e4   : > { %v1789_v49 = vadd.f32 1.0, %v2458_v48 }
 0x7e6   : > { %2461 = vrcp.f32 %v1789_v49 }
 0x7ef   : > { %v2460_v50 = vpop.eup %2459 }
 0x7f0   : > { %v1794_v32 = vmul.f32 %v2460_v50, %v1774_v36 }
 0x7f3   : > { %v2462_v51 = vpop.eup %2461 }
 0x7f4   : > { %v1795_v33 = vmul.f32 %v2462_v51, %v1777_v43 }
 0x7f6   : > { %v1796_v26 = vpack.c.bf16 %v1795_v33, %v1794_v32 }
 0x7f8   : > { %2317 = vmatmul.mubr.bf16.vlgmr.msra.gmra.mxu0 %v1796_v26 }
 0x8b8   : > { %v1902_v54 = vpop.f32.mrf.mxu0 }
 0x8b9   : > { %v1903_v55 = vadd.f32 %v2100_v53, %v1902_v54 }
 0x8ba   : > { %v2318_v56 = vpop.f32.mrf.mxu0 }
 0x8bb   : > { %v1909_v58 = vadd.f32 %v1903_v55, %v3025_v52 }
 0x8bc   : > { %v1905_v59 = vpop.f32.mrf.mxu0 }
 0x8bd   : > { %1911 = vst.msk [vmem:[%s519_s27] sm:$0xff] %vm562_vm1, %v1909_v58  ;;  %v1906_v60 = vadd.f32 %v2100_v53, %v1905_v59 }
 0x8be   : > { %v2319_v61 = vpop.f32.mrf.mxu0 }
 0x8bf   : > { %v1910_v3 = vadd.f32 %v1906_v60, %v3030_v57 }
 0x8c1   : > { %1912 = vst.msk [vmem:[%s519_s27 + $0x8] sm:$0xff] %vm562_vm1, %v1910_v3 }
 0x8c2   : > { %2554 = shalt.err (!%p2551_p6)
}
 0x8c3   : > { %s2555_s20 = scalar_lea.hbm %s3087_s25, 256  ;;  %s2559_s21 = scalar_lea.hbm %s3148_s14, 512 }
 0x8c4   : > { %p2556_p9 = scmp.ne.s32.totalorder %s3087_s25, %s2555_s20  ;;  %p2560_p3 = scmp.lt.s32.totalorder %s3087_s25, %s3148_s14 }
 0x8c5   : > { %p2561_p2 = scmp.lt.s32.totalorder %s2559_s21, %s2555_s20 }
 0x8c6   : > { %p2557_p1 = pnand %p2556_p9, %p2740_p5 }
 0x8c7   : > { %p2562_p10 = por %p2561_p2, %p2560_p3 }
 0x8c8   : > { %p2558_p13 = pneg %p2557_p1 }
 0x8ca   : > { %p2563_p12 = pnand %p2562_p10, %p2558_p13 }
 0x8cc   : > { %2566 = shalt.err (!%p2563_p12)
}
 0x8cd   : > { %s2626_s28 = smov 128  }
 0x8ce   : > { %2332 = dma.vmem_to_hbm [thread:$0]  (%p2740_p5), %s3090_s24, 256, %s3087_s25, %s3093_s17, %s2626_s28, %s2626_s28, %s2622_s29  }
 0x8cf PF: > { %s3168_s18 = sld [smem:[#allocation12_spill]]  ;;  %p2354_p4 = scmp.ge.s32.totalorder %s2609_s16, 2 }
 0x8d0   : > { %s3169_s15 = sld [smem:[#allocation16_spill]] }
 0x8d5   : > { %s1942_s19 = sand.u32 1, %s3168_s18  }
 0x8d6   : > { %p3170_p7 = scmp.ne.s32.totalorder %s3169_s15, 0  ;;  %s1943_s20 = scalar_lea.sflag [#allocation4], %s1942_s19 }
 0x8d8   : > { %p2345_p8 = pnand %p2354_p4, %p3170_p7 }
 0x8da   : > { %p2346_p11 = pneg %p2345_p8 }
 0x8dc   : > { %2592 = dma.done.wait (%p2346_p11), %s1943_s20, 256  }
 0x8dd   : > { %2594 = vsyncadd (%p2346_p11), %s1943_s20, 4294967040  ;;  %s3171_s16 = sld [smem:[#allocation14_spill]]  ;;  %s3174_s29 = smov %s2601_s30 }
 0x8de   : > { %s3172_s23 = sld [smem:[#allocation13_spill]] }
 0x8df   : > { %s3173_s15 = sld [smem:[#allocation15_spill]] }
 0x8e3   : > { %p26_p0 = scmp.ge.s32.totalorder %s3171_s16, 4  }
 0x8e4   : > { %s3175_s30 = smov %s3172_s23 }
 0x8e5   :  { %28 = sbr.rel (!%p26_p0) target bundleno = 5 (0x5), region = 127 }
 0x8ea   :  { %1948 = vsyncpa [#allocation3], 1 }
 0x8eb   :  { %1950 = vsyncpa [#allocation3 + $0x1], 1 }
 0x8ec   :  { %1951 = vsyncpa [#allocation6], 1 }
 0x8ed   :  { %1952 = vsyncpa [#allocation4], 1 }
 0x8ee   :  { %1954 = vsyncpa [#allocation4 + $0x1], 1 }

</bundles_post_ra>
